<compile_context>
chip_gen: v7x
topology: tpu7x:2x2x1
jax: 0.10.0
libtpu: 0.0.40
codegen_flags: <defaults>
</compile_context>

<pallas_src>
import math

import jax
import jax.numpy as jnp
import numpy as np
from jax.experimental import pallas as pl
from jax.experimental.pallas import tpu as pltpu


# ------------------------- static problem dimensions ------------------------ #
_NW = 2                      # l1.in_features  == input "width" W
_K1 = 3                      # l1.out_features
_K2 = 4                      # l2.out_features == conv in/out channels == conv input width
_H = 9                       # input height (pooled map flattens to l4.in_features = 4)
_HO = _H - 1                 # conv output height (valid, 2x2 kernel) = 8
_CW = 3                      # conv input columns actually reachable through the pool (m = 0..2)
_HP = _HO // 2               # pooled features per channel = 4  (pooled width is 1)
_J = 6                       # l4.out_features
_BN = 128                    # batch tile = lane width

# Packed-scalar layout inside the single SMEM parameter vector.
_W1 = 0
_B1 = _W1 + _K1 * _NW            # 6
_W2 = _B1 + _K1                  # 9
_B2 = _W2 + _K2 * _K1            # 21
_WC = _B2 + _K2                  # 25
_BC = _WC + _K2 * _K2 * 2 * 2    # 89
_NSCAL = _BC + _K2               # 93
_NPARAMS = 128                   # padded SMEM vector length


# ------------------------------ fused kernel -------------------------------- #
def _wgan_fused_kernel(scal_ref, x_ref, w4_ref, b4_ref, o_ref):
    """Whole generator forward for one lane-resident batch tile of _BN samples.

    scal_ref : SMEM (128,)        f32  packed [w1 | b1 | w2 | b2 | wc | bc]
    x_ref    : VMEM (16, 8, _BN)  f32  row (dh*4 + ci)*2 + w holds x[n, ci, h+dh, w]
                                        for h = 0..7 (two height-shifted copies)
    w4_ref   : VMEM (24, 32)      f32  block-diagonal l4 weight: selects each
                                        channel's even (pooled) rows and applies w4
    b4_ref   : VMEM (24, 1)       f32  l4 bias replicated per channel
    o_ref    : VMEM (24, _BN)     f32  row co*6 + j, batch on lanes
    """
    # ---- hoisted l1/l2 scalars: each SMEM weight is read exactly once (no
    #      redundant sld/splat per unrolled channel iteration).  Only l2 rows
    #      0..2 are needed: column 3 only feeds the pool-discarded conv column.
    w1 = [[scal_ref[_W1 + k * _NW + w] for w in range(_NW)] for k in range(_K1)]
    b1 = [scal_ref[_B1 + k] for k in range(_K1)]
    w2 = [[scal_ref[_W2 + m * _K1 + k] for k in range(_K1)] for m in range(_CW)]
    b2 = [scal_ref[_B2 + m] for m in range(_CW)]

    # ---- l1 + l2 (pointwise over (h, n)); h2[dh][ci][m] is an (8, _BN) tile with
    #      conv-input rows ho+dh on sublanes and the batch on lanes (one vreg each).
    h2 = []
    for dh in range(2):
        per_ci = []
        for ci in range(_K2):
            x0 = x_ref[(dh * _K2 + ci) * _NW + 0]            # (8, _BN)
            x1 = x_ref[(dh * _K2 + ci) * _NW + 1]
            h1 = [jnp.maximum(w1[k][0] * x0 + w1[k][1] * x1 + b1[k], 0.0)
                  for k in range(_K1)]
            per_ci.append([
                jnp.maximum(w2[m][0] * h1[0] + w2[m][1] * h1[1]
                            + w2[m][2] * h1[2] + b2[m], 0.0)
                for m in range(_CW)])
        h2.append(per_ci)

    # ---- Conv2d(4,4,2) restricted to the two conv columns the floor-mode pool
    #      keeps, fused with conv bias + relu + 2x2 max-pool.
    pooled = []
    for co in range(_K2):
        acc0 = None                                          # conv output column 0
        acc1 = None                                          # conv output column 1
        for ci in range(_K2):
            for dh in range(2):
                base = _WC + ((co * _K2 + ci) * 2 + dh) * 2
                wa = scal_ref[base + 0]                      # wc[co, ci, dh, 0]
                wb = scal_ref[base + 1]                      # wc[co, ci, dh, 1]
                t = h2[dh][ci]
                t0 = wa * t[0] + wb * t[1]
                t1 = wa * t[1] + wb * t[2]
                acc0 = t0 if acc0 is None else acc0 + t0
                acc1 = t1 if acc1 is None else acc1 + t1
        bc = scal_ref[_BC + co]
        # bias/relu are monotone, so pool the raw accumulators then bias+relu once.
        m01 = jnp.maximum(jnp.maximum(acc0, acc1) + bc, 0.0)         # (8, _BN)
        # Height pairs (2f, 2f+1): sublane rotate-by-1 (explicit slice+concat so the
        # shift direction is unambiguous) + max.  Even rows hold the pooled features;
        # odd rows are unneeded values that w4_ref multiplies by exact zeros.
        rot = jnp.concatenate([m01[1:], m01[:1]], axis=0)
        pooled.append(jnp.maximum(m01, rot))

    # ---- l4 + relu + tanh for the whole batch tile in one shot: four aligned
    #      (8, _BN) slabs -> (32, _BN); the block-diagonal (24, 32) weight both
    #      gathers the even rows and applies w4, so no sublane extraction is needed
    #      and the kernel ends with a single unmasked lane-dense store.
    stacked = jnp.concatenate(pooled, axis=0)                        # (32, _BN)
    h4 = jnp.dot(w4_ref[...], stacked, preferred_element_type=jnp.float32)
    h4 = jnp.maximum(h4 + b4_ref[...], 0.0)
    o_ref[...] = jnp.tanh(h4)                                        # tanh -> EUP


# ------------------------------ parameters ---------------------------------- #
def init_params(key):
    """Deterministic PyTorch-style (uniform +-1/sqrt(fan_in)) initialization."""
    def linear(k, fan_in, fan_out):
        k1, k2 = jax.random.split(k)
        bound = 1.0 / math.sqrt(fan_in)
        w = jax.random.uniform(k1, (fan_out, fan_in), jnp.float32, -bound, bound)
        b = jax.random.uniform(k2, (fan_out,), jnp.float32, -bound, bound)
        return w, b

    ks = jax.random.split(key, 4)
    w1, b1 = linear(ks[0], _NW, _K1)                    # nn.Linear(2, 3)
    w2, b2 = linear(ks[1], _K1, _K2)                    # nn.Linear(3, 4)
    kc1, kc2 = jax.random.split(ks[2])
    boundc = 1.0 / math.sqrt(_K2 * 2 * 2)
    wc = jax.random.uniform(kc1, (_K2, _K2, 2, 2), jnp.float32, -boundc, boundc)  # Conv2d(4,4,2)
    bc = jax.random.uniform(kc2, (_K2,), jnp.float32, -boundc, boundc)
    w4, b4 = linear(ks[3], _HP, _J)                     # nn.Linear(4, 6)
    return dict(w1=w1, b1=b1, w2=w2, b2=b2, wc=wc, bc=bc, w4=w4, b4=b4)


def pack_params(p):
    """Pack parameters once (outside jit): tiny scalars -> one SMEM vector,
    l4 -> a block-diagonal (24, 32) weight + (24, 1) bias for the fused finish."""
    scal = jnp.concatenate([
        p["w1"].reshape(-1), p["b1"],
        p["w2"].reshape(-1), p["b2"],
        p["wc"].reshape(-1), p["bc"],
    ]).astype(jnp.float32)
    assert scal.shape[0] == _NSCAL
    scal = jnp.pad(scal, (0, _NPARAMS - _NSCAL))

    w4 = np.asarray(p["w4"], np.float32)                # (6, 4)
    b4 = np.asarray(p["b4"], np.float32)                # (6,)
    # TODO(synk): the PyTorch module has no flatten before l4 (in_features=2*2) and
    # cannot run as written; as in the previous version we flatten each channel's
    # pooled (Hp, Wp)=(4, 1) map to its 4 features, matching in_features=4.
    w4big = np.zeros((_K2 * _J, _K2 * _HO), np.float32)
    for co in range(_K2):
        for j in range(_J):
            for f in range(_HP):
                w4big[co * _J + j, co * _HO + 2 * f] = w4[j, f]
    b4big = np.tile(b4, _K2).reshape(_K2 * _J, 1)
    return scal, jnp.asarray(w4big), jnp.asarray(b4big)


# -------------------------------- forward ----------------------------------- #
def wgan_generator_forward(x, scalars, w4big, b4big):
    # TODO(synk): the original forward begins with `x = x.autograd.vari`, which is a
    # bug (AttributeError) in the PyTorch source; it is skipped here.
    N, C, H, W = x.shape
    assert (C, H, W) == (_K2, _H, _NW), "input must be (N, 4, 9, 2)"

    # Lane-major, height-pre-shifted input layout (layout plumbing only):
    #   xk[(dh*4 + ci)*2 + w, h, n] = x[n, ci, h + dh, w],  h = 0..7
    x_sh = jnp.stack([x[:, :, 0:_H - 1, :], x[:, :, 1:_H, :]], axis=0)   # (2,N,4,8,2)
    xk = jnp.transpose(x_sh, (0, 2, 4, 3, 1)).reshape(2 * _K2 * _NW, _HO, N)

    n_pad = max(_BN, pl.cdiv(N, _BN) * _BN)
    if n_pad != N:                                       # pad batch to a lane multiple
        xk = jnp.pad(xk, ((0, 0), (0, 0), (0, n_pad - N)))

    out = pl.pallas_call(
        _wgan_fused_kernel,
        out_shape=jax.ShapeDtypeStruct((_K2 * _J, n_pad), jnp.float32),
        grid_spec=pltpu.PrefetchScalarGridSpec(
            num_scalar_prefetch=0,
            grid=(n_pad // _BN,),
            in_specs=[
                pl.BlockSpec(memory_space=pltpu.MemorySpace.SMEM),       # packed scalars
                pl.BlockSpec((2 * _K2 * _NW, _HO, _BN), lambda i: (0, 0, i)),
                pl.BlockSpec((_K2 * _J, _K2 * _HO), lambda i: (0, 0)),   # w4big (resident)
                pl.BlockSpec((_K2 * _J, 1), lambda i: (0, 0)),           # b4big (resident)
            ],
            out_specs=pl.BlockSpec((_K2 * _J, _BN), lambda i: (0, i)),
        ),
        compiler_params=pltpu.CompilerParams(
            dimension_semantics=("parallel",)),   # batch tiles split across TCs on v7x
    )(scalars, xk, w4big, b4big)

    # (24, n_pad) lane-major -> (N, 4, 6); layout plumbing outside the kernel.
    return out[:, :N].T.reshape(N, _K2, _J)


# --------------------------- pure-JAX reference ------------------------------ #
def reference_forward(x, p):
    relu = jax.nn.relu
    h1 = relu(jnp.einsum("nchw,kw->nchk", x, p["w1"]) + p["b1"])
    h2 = relu(jnp.einsum("nchw,kw->nchk", h1, p["w2"]) + p["b2"])
    conv = jax.lax.conv_general_dilated(h2, p["wc"], (1, 1), "VALID",
                                        dimension_numbers=("NCHW", "OIHW", "NCHW"))
    conv = relu(conv + p["bc"][None, :, None, None])
    pooled = jax.lax.reduce_window(conv, -jnp.inf, jax.lax.max,
                                   (1, 1, 2, 2), (1, 1, 2, 2), "VALID")
    pooled = pooled.reshape(x.shape[0], _K2, -1)
    h4 = relu(jnp.einsum("ncf,kf->nck", pooled, p["w4"]) + p["b4"])
    return jnp.tanh(h4)


if __name__ == "__main__":
    key = jax.random.PRNGKey(0)
    kx, kp = jax.random.split(key)
    # (N, C, H, W): W=2 matches l1.in_features; H=9 makes the pooled map flatten
    # to 4 features, matching l4.in_features.  N=256 -> two 128-lane batch tiles,
    # exercising the lane-dense layout, the batch grid and the parallel semantics.
    N = 256
    x = jax.random.normal(kx, (N, _K2, _H, _NW), jnp.float32)
    params = init_params(kp)
    scalars, w4big, b4big = pack_params(params)          # packed once, outside jit

    fwd = jax.jit(wgan_generator_forward)
    out = jax.block_until_ready(fwd(x, scalars, w4big, b4big))
    assert out.shape == (N, _K2, _J) and out.dtype == jnp.float32

    ref = reference_forward(x, params)
    np.testing.assert_allclose(np.asarray(out), np.asarray(ref), atol=1e-4, rtol=1e-4)
    print("KERNEL_OK")
</pallas_src>

<mosaic_0001>
module attributes {stable_mosaic.version = 11 : i64} {
  func.func @_wgan_fused_kernel(%arg0: i32, %arg1: memref<128xf32, #tpu.memory_space<smem>>, %arg2: memref<16x8x128xf32, #tpu.memory_space<vmem>>, %arg3: memref<24x32xf32, #tpu.memory_space<vmem>>, %arg4: memref<24x1xf32, #tpu.memory_space<vmem>>, %arg5: memref<24x128xf32, #tpu.memory_space<vmem>>) attributes {dimension_semantics = [#tpu.dimension_semantics<parallel>], iteration_bounds = array<i64: 2>, scalar_prefetch = 0 : i64, scratch_operands = 0 : i64, tpu.core_type = #tpu.core_type<tc>, window_params = [{transform_indices = @transform_0, window_bounds = array<i64: 128>}, {transform_indices = @transform_1, window_bounds = array<i64: 16, 8, 128>}, {pipeline_mode = #tpu.pipeline_mode<synchronous>, transform_indices = @transform_2, window_bounds = array<i64: 24, 32>}, {pipeline_mode = #tpu.pipeline_mode<synchronous>, transform_indices = @transform_3, window_bounds = array<i64: 24, 1>}, {transform_indices = @transform_4, window_bounds = array<i64: 24, 128>}]} {
    %c0 = arith.constant 0 : index
    %0 = memref.load %arg1[%c0] : memref<128xf32, #tpu.memory_space<smem>>
    %c1 = arith.constant 1 : index
    %1 = memref.load %arg1[%c1] : memref<128xf32, #tpu.memory_space<smem>>
    %c2 = arith.constant 2 : index
    %2 = memref.load %arg1[%c2] : memref<128xf32, #tpu.memory_space<smem>>
    %c3 = arith.constant 3 : index
    %3 = memref.load %arg1[%c3] : memref<128xf32, #tpu.memory_space<smem>>
    %c4 = arith.constant 4 : index
    %4 = memref.load %arg1[%c4] : memref<128xf32, #tpu.memory_space<smem>>
    %c5 = arith.constant 5 : index
    %5 = memref.load %arg1[%c5] : memref<128xf32, #tpu.memory_space<smem>>
    %c6 = arith.constant 6 : index
    %6 = memref.load %arg1[%c6] : memref<128xf32, #tpu.memory_space<smem>>
    %c7 = arith.constant 7 : index
    %7 = memref.load %arg1[%c7] : memref<128xf32, #tpu.memory_space<smem>>
    %c8 = arith.constant 8 : index
    %8 = memref.load %arg1[%c8] : memref<128xf32, #tpu.memory_space<smem>>
    %c9 = arith.constant 9 : index
    %9 = memref.load %arg1[%c9] : memref<128xf32, #tpu.memory_space<smem>>
    %c10 = arith.constant 10 : index
    %10 = memref.load %arg1[%c10] : memref<128xf32, #tpu.memory_space<smem>>
    %c11 = arith.constant 11 : index
    %11 = memref.load %arg1[%c11] : memref<128xf32, #tpu.memory_space<smem>>
    %c12 = arith.constant 12 : index
    %12 = memref.load %arg1[%c12] : memref<128xf32, #tpu.memory_space<smem>>
    %c13 = arith.constant 13 : index
    %13 = memref.load %arg1[%c13] : memref<128xf32, #tpu.memory_space<smem>>
    %c14 = arith.constant 14 : index
    %14 = memref.load %arg1[%c14] : memref<128xf32, #tpu.memory_space<smem>>
    %c15 = arith.constant 15 : index
    %15 = memref.load %arg1[%c15] : memref<128xf32, #tpu.memory_space<smem>>
    %c16 = arith.constant 16 : index
    %16 = memref.load %arg1[%c16] : memref<128xf32, #tpu.memory_space<smem>>
    %c17 = arith.constant 17 : index
    %17 = memref.load %arg1[%c17] : memref<128xf32, #tpu.memory_space<smem>>
    %c21 = arith.constant 21 : index
    %18 = memref.load %arg1[%c21] : memref<128xf32, #tpu.memory_space<smem>>
    %c22 = arith.constant 22 : index
    %19 = memref.load %arg1[%c22] : memref<128xf32, #tpu.memory_space<smem>>
    %c23 = arith.constant 23 : index
    %20 = memref.load %arg1[%c23] : memref<128xf32, #tpu.memory_space<smem>>
    %c0_0 = arith.constant 0 : index
    %c0_1 = arith.constant 0 : index
    %c0_2 = arith.constant 0 : index
    %21 = vector.load %arg2[%c0_0, %c0_1, %c0_2] : memref<16x8x128xf32, #tpu.memory_space<vmem>>, vector<1x8x128xf32>
    %22 = vector.shape_cast %21 : vector<1x8x128xf32> to vector<8x128xf32>
    %c1_3 = arith.constant 1 : index
    %c0_4 = arith.constant 0 : index
    %c0_5 = arith.constant 0 : index
    %23 = vector.load %arg2[%c1_3, %c0_4, %c0_5] : memref<16x8x128xf32, #tpu.memory_space<vmem>>, vector<1x8x128xf32>
    %24 = vector.shape_cast %23 : vector<1x8x128xf32> to vector<8x128xf32>
    %25 = vector.broadcast %0 : f32 to vector<8x128xf32>
    %26 = arith.mulf %25, %22 : vector<8x128xf32>
    %27 = vector.broadcast %1 : f32 to vector<8x128xf32>
    %28 = arith.mulf %27, %24 : vector<8x128xf32>
    %29 = arith.addf %26, %28 : vector<8x128xf32>
    %30 = vector.broadcast %6 : f32 to vector<8x128xf32>
    %31 = arith.addf %29, %30 : vector<8x128xf32>
    %cst = arith.constant 0.000000e+00 : f32
    %32 = vector.broadcast %cst : f32 to vector<8x128xf32>
    %33 = arith.maximumf %31, %32 : vector<8x128xf32>
    %34 = vector.broadcast %2 : f32 to vector<8x128xf32>
    %35 = arith.mulf %34, %22 : vector<8x128xf32>
    %36 = vector.broadcast %3 : f32 to vector<8x128xf32>
    %37 = arith.mulf %36, %24 : vector<8x128xf32>
    %38 = arith.addf %35, %37 : vector<8x128xf32>
    %39 = vector.broadcast %7 : f32 to vector<8x128xf32>
    %40 = arith.addf %38, %39 : vector<8x128xf32>
    %cst_6 = arith.constant 0.000000e+00 : f32
    %41 = vector.broadcast %cst_6 : f32 to vector<8x128xf32>
    %42 = arith.maximumf %40, %41 : vector<8x128xf32>
    %43 = vector.broadcast %4 : f32 to vector<8x128xf32>
    %44 = arith.mulf %43, %22 : vector<8x128xf32>
    %45 = vector.broadcast %5 : f32 to vector<8x128xf32>
    %46 = arith.mulf %45, %24 : vector<8x128xf32>
    %47 = arith.addf %44, %46 : vector<8x128xf32>
    %48 = vector.broadcast %8 : f32 to vector<8x128xf32>
    %49 = arith.addf %47, %48 : vector<8x128xf32>
    %cst_7 = arith.constant 0.000000e+00 : f32
    %50 = vector.broadcast %cst_7 : f32 to vector<8x128xf32>
    %51 = arith.maximumf %49, %50 : vector<8x128xf32>
    %52 = vector.broadcast %9 : f32 to vector<8x128xf32>
    %53 = arith.mulf %52, %33 : vector<8x128xf32>
    %54 = vector.broadcast %10 : f32 to vector<8x128xf32>
    %55 = arith.mulf %54, %42 : vector<8x128xf32>
    %56 = arith.addf %53, %55 : vector<8x128xf32>
    %57 = vector.broadcast %11 : f32 to vector<8x128xf32>
    %58 = arith.mulf %57, %51 : vector<8x128xf32>
    %59 = arith.addf %56, %58 : vector<8x128xf32>
    %60 = vector.broadcast %18 : f32 to vector<8x128xf32>
    %61 = arith.addf %59, %60 : vector<8x128xf32>
    %cst_8 = arith.constant 0.000000e+00 : f32
    %62 = vector.broadcast %cst_8 : f32 to vector<8x128xf32>
    %63 = arith.maximumf %61, %62 : vector<8x128xf32>
    %64 = vector.broadcast %12 : f32 to vector<8x128xf32>
    %65 = arith.mulf %64, %33 : vector<8x128xf32>
    %66 = vector.broadcast %13 : f32 to vector<8x128xf32>
    %67 = arith.mulf %66, %42 : vector<8x128xf32>
    %68 = arith.addf %65, %67 : vector<8x128xf32>
    %69 = vector.broadcast %14 : f32 to vector<8x128xf32>
    %70 = arith.mulf %69, %51 : vector<8x128xf32>
    %71 = arith.addf %68, %70 : vector<8x128xf32>
    %72 = vector.broadcast %19 : f32 to vector<8x128xf32>
    %73 = arith.addf %71, %72 : vector<8x128xf32>
    %cst_9 = arith.constant 0.000000e+00 : f32
    %74 = vector.broadcast %cst_9 : f32 to vector<8x128xf32>
    %75 = arith.maximumf %73, %74 : vector<8x128xf32>
    %76 = vector.broadcast %15 : f32 to vector<8x128xf32>
    %77 = arith.mulf %76, %33 : vector<8x128xf32>
    %78 = vector.broadcast %16 : f32 to vector<8x128xf32>
    %79 = arith.mulf %78, %42 : vector<8x128xf32>
    %80 = arith.addf %77, %79 : vector<8x128xf32>
    %81 = vector.broadcast %17 : f32 to vector<8x128xf32>
    %82 = arith.mulf %81, %51 : vector<8x128xf32>
    %83 = arith.addf %80, %82 : vector<8x128xf32>
    %84 = vector.broadcast %20 : f32 to vector<8x128xf32>
    %85 = arith.addf %83, %84 : vector<8x128xf32>
    %cst_10 = arith.constant 0.000000e+00 : f32
    %86 = vector.broadcast %cst_10 : f32 to vector<8x128xf32>
    %87 = arith.maximumf %85, %86 : vector<8x128xf32>
    %c2_11 = arith.constant 2 : index
    %c0_12 = arith.constant 0 : index
    %c0_13 = arith.constant 0 : index
    %88 = vector.load %arg2[%c2_11, %c0_12, %c0_13] : memref<16x8x128xf32, #tpu.memory_space<vmem>>, vector<1x8x128xf32>
    %89 = vector.shape_cast %88 : vector<1x8x128xf32> to vector<8x128xf32>
    %c3_14 = arith.constant 3 : index
    %c0_15 = arith.constant 0 : index
    %c0_16 = arith.constant 0 : index
    %90 = vector.load %arg2[%c3_14, %c0_15, %c0_16] : memref<16x8x128xf32, #tpu.memory_space<vmem>>, vector<1x8x128xf32>
    %91 = vector.shape_cast %90 : vector<1x8x128xf32> to vector<8x128xf32>
    %92 = vector.broadcast %0 : f32 to vector<8x128xf32>
    %93 = arith.mulf %92, %89 : vector<8x128xf32>
    %94 = vector.broadcast %1 : f32 to vector<8x128xf32>
    %95 = arith.mulf %94, %91 : vector<8x128xf32>
    %96 = arith.addf %93, %95 : vector<8x128xf32>
    %97 = vector.broadcast %6 : f32 to vector<8x128xf32>
    %98 = arith.addf %96, %97 : vector<8x128xf32>
    %cst_17 = arith.constant 0.000000e+00 : f32
    %99 = vector.broadcast %cst_17 : f32 to vector<8x128xf32>
    %100 = arith.maximumf %98, %99 : vector<8x128xf32>
    %101 = vector.broadcast %2 : f32 to vector<8x128xf32>
    %102 = arith.mulf %101, %89 : vector<8x128xf32>
    %103 = vector.broadcast %3 : f32 to vector<8x128xf32>
    %104 = arith.mulf %103, %91 : vector<8x128xf32>
    %105 = arith.addf %102, %104 : vector<8x128xf32>
    %106 = vector.broadcast %7 : f32 to vector<8x128xf32>
    %107 = arith.addf %105, %106 : vector<8x128xf32>
    %cst_18 = arith.constant 0.000000e+00 : f32
    %108 = vector.broadcast %cst_18 : f32 to vector<8x128xf32>
    %109 = arith.maximumf %107, %108 : vector<8x128xf32>
    %110 = vector.broadcast %4 : f32 to vector<8x128xf32>
    %111 = arith.mulf %110, %89 : vector<8x128xf32>
    %112 = vector.broadcast %5 : f32 to vector<8x128xf32>
    %113 = arith.mulf %112, %91 : vector<8x128xf32>
    %114 = arith.addf %111, %113 : vector<8x128xf32>
    %115 = vector.broadcast %8 : f32 to vector<8x128xf32>
    %116 = arith.addf %114, %115 : vector<8x128xf32>
    %cst_19 = arith.constant 0.000000e+00 : f32
    %117 = vector.broadcast %cst_19 : f32 to vector<8x128xf32>
    %118 = arith.maximumf %116, %117 : vector<8x128xf32>
    %119 = vector.broadcast %9 : f32 to vector<8x128xf32>
    %120 = arith.mulf %119, %100 : vector<8x128xf32>
    %121 = vector.broadcast %10 : f32 to vector<8x128xf32>
    %122 = arith.mulf %121, %109 : vector<8x128xf32>
    %123 = arith.addf %120, %122 : vector<8x128xf32>
    %124 = vector.broadcast %11 : f32 to vector<8x128xf32>
    %125 = arith.mulf %124, %118 : vector<8x128xf32>
    %126 = arith.addf %123, %125 : vector<8x128xf32>
    %127 = vector.broadcast %18 : f32 to vector<8x128xf32>
    %128 = arith.addf %126, %127 : vector<8x128xf32>
    %cst_20 = arith.constant 0.000000e+00 : f32
    %129 = vector.broadcast %cst_20 : f32 to vector<8x128xf32>
    %130 = arith.maximumf %128, %129 : vector<8x128xf32>
    %131 = vector.broadcast %12 : f32 to vector<8x128xf32>
    %132 = arith.mulf %131, %100 : vector<8x128xf32>
    %133 = vector.broadcast %13 : f32 to vector<8x128xf32>
    %134 = arith.mulf %133, %109 : vector<8x128xf32>
    %135 = arith.addf %132, %134 : vector<8x128xf32>
    %136 = vector.broadcast %14 : f32 to vector<8x128xf32>
    %137 = arith.mulf %136, %118 : vector<8x128xf32>
    %138 = arith.addf %135, %137 : vector<8x128xf32>
    %139 = vector.broadcast %19 : f32 to vector<8x128xf32>
    %140 = arith.addf %138, %139 : vector<8x128xf32>
    %cst_21 = arith.constant 0.000000e+00 : f32
    %141 = vector.broadcast %cst_21 : f32 to vector<8x128xf32>
    %142 = arith.maximumf %140, %141 : vector<8x128xf32>
    %143 = vector.broadcast %15 : f32 to vector<8x128xf32>
    %144 = arith.mulf %143, %100 : vector<8x128xf32>
    %145 = vector.broadcast %16 : f32 to vector<8x128xf32>
    %146 = arith.mulf %145, %109 : vector<8x128xf32>
    %147 = arith.addf %144, %146 : vector<8x128xf32>
    %148 = vector.broadcast %17 : f32 to vector<8x128xf32>
    %149 = arith.mulf %148, %118 : vector<8x128xf32>
    %150 = arith.addf %147, %149 : vector<8x128xf32>
    %151 = vector.broadcast %20 : f32 to vector<8x128xf32>
    %152 = arith.addf %150, %151 : vector<8x128xf32>
    %cst_22 = arith.constant 0.000000e+00 : f32
    %153 = vector.broadcast %cst_22 : f32 to vector<8x128xf32>
    %154 = arith.maximumf %152, %153 : vector<8x128xf32>
    %c4_23 = arith.constant 4 : index
    %c0_24 = arith.constant 0 : index
    %c0_25 = arith.constant 0 : index
    %155 = vector.load %arg2[%c4_23, %c0_24, %c0_25] : memref<16x8x128xf32, #tpu.memory_space<vmem>>, vector<1x8x128xf32>
    %156 = vector.shape_cast %155 : vector<1x8x128xf32> to vector<8x128xf32>
    %c5_26 = arith.constant 5 : index
    %c0_27 = arith.constant 0 : index
    %c0_28 = arith.constant 0 : index
    %157 = vector.load %arg2[%c5_26, %c0_27, %c0_28] : memref<16x8x128xf32, #tpu.memory_space<vmem>>, vector<1x8x128xf32>
    %158 = vector.shape_cast %157 : vector<1x8x128xf32> to vector<8x128xf32>
    %159 = vector.broadcast %0 : f32 to vector<8x128xf32>
    %160 = arith.mulf %159, %156 : vector<8x128xf32>
    %161 = vector.broadcast %1 : f32 to vector<8x128xf32>
    %162 = arith.mulf %161, %158 : vector<8x128xf32>
    %163 = arith.addf %160, %162 : vector<8x128xf32>
    %164 = vector.broadcast %6 : f32 to vector<8x128xf32>
    %165 = arith.addf %163, %164 : vector<8x128xf32>
    %cst_29 = arith.constant 0.000000e+00 : f32
    %166 = vector.broadcast %cst_29 : f32 to vector<8x128xf32>
    %167 = arith.maximumf %165, %166 : vector<8x128xf32>
    %168 = vector.broadcast %2 : f32 to vector<8x128xf32>
    %169 = arith.mulf %168, %156 : vector<8x128xf32>
    %170 = vector.broadcast %3 : f32 to vector<8x128xf32>
    %171 = arith.mulf %170, %158 : vector<8x128xf32>
    %172 = arith.addf %169, %171 : vector<8x128xf32>
    %173 = vector.broadcast %7 : f32 to vector<8x128xf32>
    %174 = arith.addf %172, %173 : vector<8x128xf32>
    %cst_30 = arith.constant 0.000000e+00 : f32
    %175 = vector.broadcast %cst_30 : f32 to vector<8x128xf32>
    %176 = arith.maximumf %174, %175 : vector<8x128xf32>
    %177 = vector.broadcast %4 : f32 to vector<8x128xf32>
    %178 = arith.mulf %177, %156 : vector<8x128xf32>
    %179 = vector.broadcast %5 : f32 to vector<8x128xf32>
    %180 = arith.mulf %179, %158 : vector<8x128xf32>
    %181 = arith.addf %178, %180 : vector<8x128xf32>
    %182 = vector.broadcast %8 : f32 to vector<8x128xf32>
    %183 = arith.addf %181, %182 : vector<8x128xf32>
    %cst_31 = arith.constant 0.000000e+00 : f32
    %184 = vector.broadcast %cst_31 : f32 to vector<8x128xf32>
    %185 = arith.maximumf %183, %184 : vector<8x128xf32>
    %186 = vector.broadcast %9 : f32 to vector<8x128xf32>
    %187 = arith.mulf %186, %167 : vector<8x128xf32>
    %188 = vector.broadcast %10 : f32 to vector<8x128xf32>
    %189 = arith.mulf %188, %176 : vector<8x128xf32>
    %190 = arith.addf %187, %189 : vector<8x128xf32>
    %191 = vector.broadcast %11 : f32 to vector<8x128xf32>
    %192 = arith.mulf %191, %185 : vector<8x128xf32>
    %193 = arith.addf %190, %192 : vector<8x128xf32>
    %194 = vector.broadcast %18 : f32 to vector<8x128xf32>
    %195 = arith.addf %193, %194 : vector<8x128xf32>
    %cst_32 = arith.constant 0.000000e+00 : f32
    %196 = vector.broadcast %cst_32 : f32 to vector<8x128xf32>
    %197 = arith.maximumf %195, %196 : vector<8x128xf32>
    %198 = vector.broadcast %12 : f32 to vector<8x128xf32>
    %199 = arith.mulf %198, %167 : vector<8x128xf32>
    %200 = vector.broadcast %13 : f32 to vector<8x128xf32>
    %201 = arith.mulf %200, %176 : vector<8x128xf32>
    %202 = arith.addf %199, %201 : vector<8x128xf32>
    %203 = vector.broadcast %14 : f32 to vector<8x128xf32>
    %204 = arith.mulf %203, %185 : vector<8x128xf32>
    %205 = arith.addf %202, %204 : vector<8x128xf32>
    %206 = vector.broadcast %19 : f32 to vector<8x128xf32>
    %207 = arith.addf %205, %206 : vector<8x128xf32>
    %cst_33 = arith.constant 0.000000e+00 : f32
    %208 = vector.broadcast %cst_33 : f32 to vector<8x128xf32>
    %209 = arith.maximumf %207, %208 : vector<8x128xf32>
    %210 = vector.broadcast %15 : f32 to vector<8x128xf32>
    %211 = arith.mulf %210, %167 : vector<8x128xf32>
    %212 = vector.broadcast %16 : f32 to vector<8x128xf32>
    %213 = arith.mulf %212, %176 : vector<8x128xf32>
    %214 = arith.addf %211, %213 : vector<8x128xf32>
    %215 = vector.broadcast %17 : f32 to vector<8x128xf32>
    %216 = arith.mulf %215, %185 : vector<8x128xf32>
    %217 = arith.addf %214, %216 : vector<8x128xf32>
    %218 = vector.broadcast %20 : f32 to vector<8x128xf32>
    %219 = arith.addf %217, %218 : vector<8x128xf32>
    %cst_34 = arith.constant 0.000000e+00 : f32
    %220 = vector.broadcast %cst_34 : f32 to vector<8x128xf32>
    %221 = arith.maximumf %219, %220 : vector<8x128xf32>
    %c6_35 = arith.constant 6 : index
    %c0_36 = arith.constant 0 : index
    %c0_37 = arith.constant 0 : index
    %222 = vector.load %arg2[%c6_35, %c0_36, %c0_37] : memref<16x8x128xf32, #tpu.memory_space<vmem>>, vector<1x8x128xf32>
    %223 = vector.shape_cast %222 : vector<1x8x128xf32> to vector<8x128xf32>
    %c7_38 = arith.constant 7 : index
    %c0_39 = arith.constant 0 : index
    %c0_40 = arith.constant 0 : index
    %224 = vector.load %arg2[%c7_38, %c0_39, %c0_40] : memref<16x8x128xf32, #tpu.memory_space<vmem>>, vector<1x8x128xf32>
    %225 = vector.shape_cast %224 : vector<1x8x128xf32> to vector<8x128xf32>
    %226 = vector.broadcast %0 : f32 to vector<8x128xf32>
    %227 = arith.mulf %226, %223 : vector<8x128xf32>
    %228 = vector.broadcast %1 : f32 to vector<8x128xf32>
    %229 = arith.mulf %228, %225 : vector<8x128xf32>
    %230 = arith.addf %227, %229 : vector<8x128xf32>
    %231 = vector.broadcast %6 : f32 to vector<8x128xf32>
    %232 = arith.addf %230, %231 : vector<8x128xf32>
    %cst_41 = arith.constant 0.000000e+00 : f32
    %233 = vector.broadcast %cst_41 : f32 to vector<8x128xf32>
    %234 = arith.maximumf %232, %233 : vector<8x128xf32>
    %235 = vector.broadcast %2 : f32 to vector<8x128xf32>
    %236 = arith.mulf %235, %223 : vector<8x128xf32>
    %237 = vector.broadcast %3 : f32 to vector<8x128xf32>
    %238 = arith.mulf %237, %225 : vector<8x128xf32>
    %239 = arith.addf %236, %238 : vector<8x128xf32>
    %240 = vector.broadcast %7 : f32 to vector<8x128xf32>
    %241 = arith.addf %239, %240 : vector<8x128xf32>
    %cst_42 = arith.constant 0.000000e+00 : f32
    %242 = vector.broadcast %cst_42 : f32 to vector<8x128xf32>
    %243 = arith.maximumf %241, %242 : vector<8x128xf32>
    %244 = vector.broadcast %4 : f32 to vector<8x128xf32>
    %245 = arith.mulf %244, %223 : vector<8x128xf32>
    %246 = vector.broadcast %5 : f32 to vector<8x128xf32>
    %247 = arith.mulf %246, %225 : vector<8x128xf32>
    %248 = arith.addf %245, %247 : vector<8x128xf32>
    %249 = vector.broadcast %8 : f32 to vector<8x128xf32>
    %250 = arith.addf %248, %249 : vector<8x128xf32>
    %cst_43 = arith.constant 0.000000e+00 : f32
    %251 = vector.broadcast %cst_43 : f32 to vector<8x128xf32>
    %252 = arith.maximumf %250, %251 : vector<8x128xf32>
    %253 = vector.broadcast %9 : f32 to vector<8x128xf32>
    %254 = arith.mulf %253, %234 : vector<8x128xf32>
    %255 = vector.broadcast %10 : f32 to vector<8x128xf32>
    %256 = arith.mulf %255, %243 : vector<8x128xf32>
    %257 = arith.addf %254, %256 : vector<8x128xf32>
    %258 = vector.broadcast %11 : f32 to vector<8x128xf32>
    %259 = arith.mulf %258, %252 : vector<8x128xf32>
    %260 = arith.addf %257, %259 : vector<8x128xf32>
    %261 = vector.broadcast %18 : f32 to vector<8x128xf32>
    %262 = arith.addf %260, %261 : vector<8x128xf32>
    %cst_44 = arith.constant 0.000000e+00 : f32
    %263 = vector.broadcast %cst_44 : f32 to vector<8x128xf32>
    %264 = arith.maximumf %262, %263 : vector<8x128xf32>
    %265 = vector.broadcast %12 : f32 to vector<8x128xf32>
    %266 = arith.mulf %265, %234 : vector<8x128xf32>
    %267 = vector.broadcast %13 : f32 to vector<8x128xf32>
    %268 = arith.mulf %267, %243 : vector<8x128xf32>
    %269 = arith.addf %266, %268 : vector<8x128xf32>
    %270 = vector.broadcast %14 : f32 to vector<8x128xf32>
    %271 = arith.mulf %270, %252 : vector<8x128xf32>
    %272 = arith.addf %269, %271 : vector<8x128xf32>
    %273 = vector.broadcast %19 : f32 to vector<8x128xf32>
    %274 = arith.addf %272, %273 : vector<8x128xf32>
    %cst_45 = arith.constant 0.000000e+00 : f32
    %275 = vector.broadcast %cst_45 : f32 to vector<8x128xf32>
    %276 = arith.maximumf %274, %275 : vector<8x128xf32>
    %277 = vector.broadcast %15 : f32 to vector<8x128xf32>
    %278 = arith.mulf %277, %234 : vector<8x128xf32>
    %279 = vector.broadcast %16 : f32 to vector<8x128xf32>
    %280 = arith.mulf %279, %243 : vector<8x128xf32>
    %281 = arith.addf %278, %280 : vector<8x128xf32>
    %282 = vector.broadcast %17 : f32 to vector<8x128xf32>
    %283 = arith.mulf %282, %252 : vector<8x128xf32>
    %284 = arith.addf %281, %283 : vector<8x128xf32>
    %285 = vector.broadcast %20 : f32 to vector<8x128xf32>
    %286 = arith.addf %284, %285 : vector<8x128xf32>
    %cst_46 = arith.constant 0.000000e+00 : f32
    %287 = vector.broadcast %cst_46 : f32 to vector<8x128xf32>
    %288 = arith.maximumf %286, %287 : vector<8x128xf32>
    %c8_47 = arith.constant 8 : index
    %c0_48 = arith.constant 0 : index
    %c0_49 = arith.constant 0 : index
    %289 = vector.load %arg2[%c8_47, %c0_48, %c0_49] : memref<16x8x128xf32, #tpu.memory_space<vmem>>, vector<1x8x128xf32>
    %290 = vector.shape_cast %289 : vector<1x8x128xf32> to vector<8x128xf32>
    %c9_50 = arith.constant 9 : index
    %c0_51 = arith.constant 0 : index
    %c0_52 = arith.constant 0 : index
    %291 = vector.load %arg2[%c9_50, %c0_51, %c0_52] : memref<16x8x128xf32, #tpu.memory_space<vmem>>, vector<1x8x128xf32>
    %292 = vector.shape_cast %291 : vector<1x8x128xf32> to vector<8x128xf32>
    %293 = vector.broadcast %0 : f32 to vector<8x128xf32>
    %294 = arith.mulf %293, %290 : vector<8x128xf32>
    %295 = vector.broadcast %1 : f32 to vector<8x128xf32>
    %296 = arith.mulf %295, %292 : vector<8x128xf32>
    %297 = arith.addf %294, %296 : vector<8x128xf32>
    %298 = vector.broadcast %6 : f32 to vector<8x128xf32>
    %299 = arith.addf %297, %298 : vector<8x128xf32>
    %cst_53 = arith.constant 0.000000e+00 : f32
    %300 = vector.broadcast %cst_53 : f32 to vector<8x128xf32>
    %301 = arith.maximumf %299, %300 : vector<8x128xf32>
    %302 = vector.broadcast %2 : f32 to vector<8x128xf32>
    %303 = arith.mulf %302, %290 : vector<8x128xf32>
    %304 = vector.broadcast %3 : f32 to vector<8x128xf32>
    %305 = arith.mulf %304, %292 : vector<8x128xf32>
    %306 = arith.addf %303, %305 : vector<8x128xf32>
    %307 = vector.broadcast %7 : f32 to vector<8x128xf32>
    %308 = arith.addf %306, %307 : vector<8x128xf32>
    %cst_54 = arith.constant 0.000000e+00 : f32
    %309 = vector.broadcast %cst_54 : f32 to vector<8x128xf32>
    %310 = arith.maximumf %308, %309 : vector<8x128xf32>
    %311 = vector.broadcast %4 : f32 to vector<8x128xf32>
    %312 = arith.mulf %311, %290 : vector<8x128xf32>
    %313 = vector.broadcast %5 : f32 to vector<8x128xf32>
    %314 = arith.mulf %313, %292 : vector<8x128xf32>
    %315 = arith.addf %312, %314 : vector<8x128xf32>
    %316 = vector.broadcast %8 : f32 to vector<8x128xf32>
    %317 = arith.addf %315, %316 : vector<8x128xf32>
    %cst_55 = arith.constant 0.000000e+00 : f32
    %318 = vector.broadcast %cst_55 : f32 to vector<8x128xf32>
    %319 = arith.maximumf %317, %318 : vector<8x128xf32>
    %320 = vector.broadcast %9 : f32 to vector<8x128xf32>
    %321 = arith.mulf %320, %301 : vector<8x128xf32>
    %322 = vector.broadcast %10 : f32 to vector<8x128xf32>
    %323 = arith.mulf %322, %310 : vector<8x128xf32>
    %324 = arith.addf %321, %323 : vector<8x128xf32>
    %325 = vector.broadcast %11 : f32 to vector<8x128xf32>
    %326 = arith.mulf %325, %319 : vector<8x128xf32>
    %327 = arith.addf %324, %326 : vector<8x128xf32>
    %328 = vector.broadcast %18 : f32 to vector<8x128xf32>
    %329 = arith.addf %327, %328 : vector<8x128xf32>
    %cst_56 = arith.constant 0.000000e+00 : f32
    %330 = vector.broadcast %cst_56 : f32 to vector<8x128xf32>
    %331 = arith.maximumf %329, %330 : vector<8x128xf32>
    %332 = vector.broadcast %12 : f32 to vector<8x128xf32>
    %333 = arith.mulf %332, %301 : vector<8x128xf32>
    %334 = vector.broadcast %13 : f32 to vector<8x128xf32>
    %335 = arith.mulf %334, %310 : vector<8x128xf32>
    %336 = arith.addf %333, %335 : vector<8x128xf32>
    %337 = vector.broadcast %14 : f32 to vector<8x128xf32>
    %338 = arith.mulf %337, %319 : vector<8x128xf32>
    %339 = arith.addf %336, %338 : vector<8x128xf32>
    %340 = vector.broadcast %19 : f32 to vector<8x128xf32>
    %341 = arith.addf %339, %340 : vector<8x128xf32>
    %cst_57 = arith.constant 0.000000e+00 : f32
    %342 = vector.broadcast %cst_57 : f32 to vector<8x128xf32>
    %343 = arith.maximumf %341, %342 : vector<8x128xf32>
    %344 = vector.broadcast %15 : f32 to vector<8x128xf32>
    %345 = arith.mulf %344, %301 : vector<8x128xf32>
    %346 = vector.broadcast %16 : f32 to vector<8x128xf32>
    %347 = arith.mulf %346, %310 : vector<8x128xf32>
    %348 = arith.addf %345, %347 : vector<8x128xf32>
    %349 = vector.broadcast %17 : f32 to vector<8x128xf32>
    %350 = arith.mulf %349, %319 : vector<8x128xf32>
    %351 = arith.addf %348, %350 : vector<8x128xf32>
    %352 = vector.broadcast %20 : f32 to vector<8x128xf32>
    %353 = arith.addf %351, %352 : vector<8x128xf32>
    %cst_58 = arith.constant 0.000000e+00 : f32
    %354 = vector.broadcast %cst_58 : f32 to vector<8x128xf32>
    %355 = arith.maximumf %353, %354 : vector<8x128xf32>
    %c10_59 = arith.constant 10 : index
    %c0_60 = arith.constant 0 : index
    %c0_61 = arith.constant 0 : index
    %356 = vector.load %arg2[%c10_59, %c0_60, %c0_61] : memref<16x8x128xf32, #tpu.memory_space<vmem>>, vector<1x8x128xf32>
    %357 = vector.shape_cast %356 : vector<1x8x128xf32> to vector<8x128xf32>
    %c11_62 = arith.constant 11 : index
    %c0_63 = arith.constant 0 : index
    %c0_64 = arith.constant 0 : index
    %358 = vector.load %arg2[%c11_62, %c0_63, %c0_64] : memref<16x8x128xf32, #tpu.memory_space<vmem>>, vector<1x8x128xf32>
    %359 = vector.shape_cast %358 : vector<1x8x128xf32> to vector<8x128xf32>
    %360 = vector.broadcast %0 : f32 to vector<8x128xf32>
    %361 = arith.mulf %360, %357 : vector<8x128xf32>
    %362 = vector.broadcast %1 : f32 to vector<8x128xf32>
    %363 = arith.mulf %362, %359 : vector<8x128xf32>
    %364 = arith.addf %361, %363 : vector<8x128xf32>
    %365 = vector.broadcast %6 : f32 to vector<8x128xf32>
    %366 = arith.addf %364, %365 : vector<8x128xf32>
    %cst_65 = arith.constant 0.000000e+00 : f32
    %367 = vector.broadcast %cst_65 : f32 to vector<8x128xf32>
    %368 = arith.maximumf %366, %367 : vector<8x128xf32>
    %369 = vector.broadcast %2 : f32 to vector<8x128xf32>
    %370 = arith.mulf %369, %357 : vector<8x128xf32>
    %371 = vector.broadcast %3 : f32 to vector<8x128xf32>
    %372 = arith.mulf %371, %359 : vector<8x128xf32>
    %373 = arith.addf %370, %372 : vector<8x128xf32>
    %374 = vector.broadcast %7 : f32 to vector<8x128xf32>
    %375 = arith.addf %373, %374 : vector<8x128xf32>
    %cst_66 = arith.constant 0.000000e+00 : f32
    %376 = vector.broadcast %cst_66 : f32 to vector<8x128xf32>
    %377 = arith.maximumf %375, %376 : vector<8x128xf32>
    %378 = vector.broadcast %4 : f32 to vector<8x128xf32>
    %379 = arith.mulf %378, %357 : vector<8x128xf32>
    %380 = vector.broadcast %5 : f32 to vector<8x128xf32>
    %381 = arith.mulf %380, %359 : vector<8x128xf32>
    %382 = arith.addf %379, %381 : vector<8x128xf32>
    %383 = vector.broadcast %8 : f32 to vector<8x128xf32>
    %384 = arith.addf %382, %383 : vector<8x128xf32>
    %cst_67 = arith.constant 0.000000e+00 : f32
    %385 = vector.broadcast %cst_67 : f32 to vector<8x128xf32>
    %386 = arith.maximumf %384, %385 : vector<8x128xf32>
    %387 = vector.broadcast %9 : f32 to vector<8x128xf32>
    %388 = arith.mulf %387, %368 : vector<8x128xf32>
    %389 = vector.broadcast %10 : f32 to vector<8x128xf32>
    %390 = arith.mulf %389, %377 : vector<8x128xf32>
    %391 = arith.addf %388, %390 : vector<8x128xf32>
    %392 = vector.broadcast %11 : f32 to vector<8x128xf32>
    %393 = arith.mulf %392, %386 : vector<8x128xf32>
    %394 = arith.addf %391, %393 : vector<8x128xf32>
    %395 = vector.broadcast %18 : f32 to vector<8x128xf32>
    %396 = arith.addf %394, %395 : vector<8x128xf32>
    %cst_68 = arith.constant 0.000000e+00 : f32
    %397 = vector.broadcast %cst_68 : f32 to vector<8x128xf32>
    %398 = arith.maximumf %396, %397 : vector<8x128xf32>
    %399 = vector.broadcast %12 : f32 to vector<8x128xf32>
    %400 = arith.mulf %399, %368 : vector<8x128xf32>
    %401 = vector.broadcast %13 : f32 to vector<8x128xf32>
    %402 = arith.mulf %401, %377 : vector<8x128xf32>
    %403 = arith.addf %400, %402 : vector<8x128xf32>
    %404 = vector.broadcast %14 : f32 to vector<8x128xf32>
    %405 = arith.mulf %404, %386 : vector<8x128xf32>
    %406 = arith.addf %403, %405 : vector<8x128xf32>
    %407 = vector.broadcast %19 : f32 to vector<8x128xf32>
    %408 = arith.addf %406, %407 : vector<8x128xf32>
    %cst_69 = arith.constant 0.000000e+00 : f32
    %409 = vector.broadcast %cst_69 : f32 to vector<8x128xf32>
    %410 = arith.maximumf %408, %409 : vector<8x128xf32>
    %411 = vector.broadcast %15 : f32 to vector<8x128xf32>
    %412 = arith.mulf %411, %368 : vector<8x128xf32>
    %413 = vector.broadcast %16 : f32 to vector<8x128xf32>
    %414 = arith.mulf %413, %377 : vector<8x128xf32>
    %415 = arith.addf %412, %414 : vector<8x128xf32>
    %416 = vector.broadcast %17 : f32 to vector<8x128xf32>
    %417 = arith.mulf %416, %386 : vector<8x128xf32>
    %418 = arith.addf %415, %417 : vector<8x128xf32>
    %419 = vector.broadcast %20 : f32 to vector<8x128xf32>
    %420 = arith.addf %418, %419 : vector<8x128xf32>
    %cst_70 = arith.constant 0.000000e+00 : f32
    %421 = vector.broadcast %cst_70 : f32 to vector<8x128xf32>
    %422 = arith.maximumf %420, %421 : vector<8x128xf32>
    %c12_71 = arith.constant 12 : index
    %c0_72 = arith.constant 0 : index
    %c0_73 = arith.constant 0 : index
    %423 = vector.load %arg2[%c12_71, %c0_72, %c0_73] : memref<16x8x128xf32, #tpu.memory_space<vmem>>, vector<1x8x128xf32>
    %424 = vector.shape_cast %423 : vector<1x8x128xf32> to vector<8x128xf32>
    %c13_74 = arith.constant 13 : index
    %c0_75 = arith.constant 0 : index
    %c0_76 = arith.constant 0 : index
    %425 = vector.load %arg2[%c13_74, %c0_75, %c0_76] : memref<16x8x128xf32, #tpu.memory_space<vmem>>, vector<1x8x128xf32>
    %426 = vector.shape_cast %425 : vector<1x8x128xf32> to vector<8x128xf32>
    %427 = vector.broadcast %0 : f32 to vector<8x128xf32>
    %428 = arith.mulf %427, %424 : vector<8x128xf32>
    %429 = vector.broadcast %1 : f32 to vector<8x128xf32>
    %430 = arith.mulf %429, %426 : vector<8x128xf32>
    %431 = arith.addf %428, %430 : vector<8x128xf32>
    %432 = vector.broadcast %6 : f32 to vector<8x128xf32>
    %433 = arith.addf %431, %432 : vector<8x128xf32>
    %cst_77 = arith.constant 0.000000e+00 : f32
    %434 = vector.broadcast %cst_77 : f32 to vector<8x128xf32>
    %435 = arith.maximumf %433, %434 : vector<8x128xf32>
    %436 = vector.broadcast %2 : f32 to vector<8x128xf32>
    %437 = arith.mulf %436, %424 : vector<8x128xf32>
    %438 = vector.broadcast %3 : f32 to vector<8x128xf32>
    %439 = arith.mulf %438, %426 : vector<8x128xf32>
    %440 = arith.addf %437, %439 : vector<8x128xf32>
    %441 = vector.broadcast %7 : f32 to vector<8x128xf32>
    %442 = arith.addf %440, %441 : vector<8x128xf32>
    %cst_78 = arith.constant 0.000000e+00 : f32
    %443 = vector.broadcast %cst_78 : f32 to vector<8x128xf32>
    %444 = arith.maximumf %442, %443 : vector<8x128xf32>
    %445 = vector.broadcast %4 : f32 to vector<8x128xf32>
    %446 = arith.mulf %445, %424 : vector<8x128xf32>
    %447 = vector.broadcast %5 : f32 to vector<8x128xf32>
    %448 = arith.mulf %447, %426 : vector<8x128xf32>
    %449 = arith.addf %446, %448 : vector<8x128xf32>
    %450 = vector.broadcast %8 : f32 to vector<8x128xf32>
    %451 = arith.addf %449, %450 : vector<8x128xf32>
    %cst_79 = arith.constant 0.000000e+00 : f32
    %452 = vector.broadcast %cst_79 : f32 to vector<8x128xf32>
    %453 = arith.maximumf %451, %452 : vector<8x128xf32>
    %454 = vector.broadcast %9 : f32 to vector<8x128xf32>
    %455 = arith.mulf %454, %435 : vector<8x128xf32>
    %456 = vector.broadcast %10 : f32 to vector<8x128xf32>
    %457 = arith.mulf %456, %444 : vector<8x128xf32>
    %458 = arith.addf %455, %457 : vector<8x128xf32>
    %459 = vector.broadcast %11 : f32 to vector<8x128xf32>
    %460 = arith.mulf %459, %453 : vector<8x128xf32>
    %461 = arith.addf %458, %460 : vector<8x128xf32>
    %462 = vector.broadcast %18 : f32 to vector<8x128xf32>
    %463 = arith.addf %461, %462 : vector<8x128xf32>
    %cst_80 = arith.constant 0.000000e+00 : f32
    %464 = vector.broadcast %cst_80 : f32 to vector<8x128xf32>
    %465 = arith.maximumf %463, %464 : vector<8x128xf32>
    %466 = vector.broadcast %12 : f32 to vector<8x128xf32>
    %467 = arith.mulf %466, %435 : vector<8x128xf32>
    %468 = vector.broadcast %13 : f32 to vector<8x128xf32>
    %469 = arith.mulf %468, %444 : vector<8x128xf32>
    %470 = arith.addf %467, %469 : vector<8x128xf32>
    %471 = vector.broadcast %14 : f32 to vector<8x128xf32>
    %472 = arith.mulf %471, %453 : vector<8x128xf32>
    %473 = arith.addf %470, %472 : vector<8x128xf32>
    %474 = vector.broadcast %19 : f32 to vector<8x128xf32>
    %475 = arith.addf %473, %474 : vector<8x128xf32>
    %cst_81 = arith.constant 0.000000e+00 : f32
    %476 = vector.broadcast %cst_81 : f32 to vector<8x128xf32>
    %477 = arith.maximumf %475, %476 : vector<8x128xf32>
    %478 = vector.broadcast %15 : f32 to vector<8x128xf32>
    %479 = arith.mulf %478, %435 : vector<8x128xf32>
    %480 = vector.broadcast %16 : f32 to vector<8x128xf32>
    %481 = arith.mulf %480, %444 : vector<8x128xf32>
    %482 = arith.addf %479, %481 : vector<8x128xf32>
    %483 = vector.broadcast %17 : f32 to vector<8x128xf32>
    %484 = arith.mulf %483, %453 : vector<8x128xf32>
    %485 = arith.addf %482, %484 : vector<8x128xf32>
    %486 = vector.broadcast %20 : f32 to vector<8x128xf32>
    %487 = arith.addf %485, %486 : vector<8x128xf32>
    %cst_82 = arith.constant 0.000000e+00 : f32
    %488 = vector.broadcast %cst_82 : f32 to vector<8x128xf32>
    %489 = arith.maximumf %487, %488 : vector<8x128xf32>
    %c14_83 = arith.constant 14 : index
    %c0_84 = arith.constant 0 : index
    %c0_85 = arith.constant 0 : index
    %490 = vector.load %arg2[%c14_83, %c0_84, %c0_85] : memref<16x8x128xf32, #tpu.memory_space<vmem>>, vector<1x8x128xf32>
    %491 = vector.shape_cast %490 : vector<1x8x128xf32> to vector<8x128xf32>
    %c15_86 = arith.constant 15 : index
    %c0_87 = arith.constant 0 : index
    %c0_88 = arith.constant 0 : index
    %492 = vector.load %arg2[%c15_86, %c0_87, %c0_88] : memref<16x8x128xf32, #tpu.memory_space<vmem>>, vector<1x8x128xf32>
    %493 = vector.shape_cast %492 : vector<1x8x128xf32> to vector<8x128xf32>
    %494 = vector.broadcast %0 : f32 to vector<8x128xf32>
    %495 = arith.mulf %494, %491 : vector<8x128xf32>
    %496 = vector.broadcast %1 : f32 to vector<8x128xf32>
    %497 = arith.mulf %496, %493 : vector<8x128xf32>
    %498 = arith.addf %495, %497 : vector<8x128xf32>
    %499 = vector.broadcast %6 : f32 to vector<8x128xf32>
    %500 = arith.addf %498, %499 : vector<8x128xf32>
    %cst_89 = arith.constant 0.000000e+00 : f32
    %501 = vector.broadcast %cst_89 : f32 to vector<8x128xf32>
    %502 = arith.maximumf %500, %501 : vector<8x128xf32>
    %503 = vector.broadcast %2 : f32 to vector<8x128xf32>
    %504 = arith.mulf %503, %491 : vector<8x128xf32>
    %505 = vector.broadcast %3 : f32 to vector<8x128xf32>
    %506 = arith.mulf %505, %493 : vector<8x128xf32>
    %507 = arith.addf %504, %506 : vector<8x128xf32>
    %508 = vector.broadcast %7 : f32 to vector<8x128xf32>
    %509 = arith.addf %507, %508 : vector<8x128xf32>
    %cst_90 = arith.constant 0.000000e+00 : f32
    %510 = vector.broadcast %cst_90 : f32 to vector<8x128xf32>
    %511 = arith.maximumf %509, %510 : vector<8x128xf32>
    %512 = vector.broadcast %4 : f32 to vector<8x128xf32>
    %513 = arith.mulf %512, %491 : vector<8x128xf32>
    %514 = vector.broadcast %5 : f32 to vector<8x128xf32>
    %515 = arith.mulf %514, %493 : vector<8x128xf32>
    %516 = arith.addf %513, %515 : vector<8x128xf32>
    %517 = vector.broadcast %8 : f32 to vector<8x128xf32>
    %518 = arith.addf %516, %517 : vector<8x128xf32>
    %cst_91 = arith.constant 0.000000e+00 : f32
    %519 = vector.broadcast %cst_91 : f32 to vector<8x128xf32>
    %520 = arith.maximumf %518, %519 : vector<8x128xf32>
    %521 = vector.broadcast %9 : f32 to vector<8x128xf32>
    %522 = arith.mulf %521, %502 : vector<8x128xf32>
    %523 = vector.broadcast %10 : f32 to vector<8x128xf32>
    %524 = arith.mulf %523, %511 : vector<8x128xf32>
    %525 = arith.addf %522, %524 : vector<8x128xf32>
    %526 = vector.broadcast %11 : f32 to vector<8x128xf32>
    %527 = arith.mulf %526, %520 : vector<8x128xf32>
    %528 = arith.addf %525, %527 : vector<8x128xf32>
    %529 = vector.broadcast %18 : f32 to vector<8x128xf32>
    %530 = arith.addf %528, %529 : vector<8x128xf32>
    %cst_92 = arith.constant 0.000000e+00 : f32
    %531 = vector.broadcast %cst_92 : f32 to vector<8x128xf32>
    %532 = arith.maximumf %530, %531 : vector<8x128xf32>
    %533 = vector.broadcast %12 : f32 to vector<8x128xf32>
    %534 = arith.mulf %533, %502 : vector<8x128xf32>
    %535 = vector.broadcast %13 : f32 to vector<8x128xf32>
    %536 = arith.mulf %535, %511 : vector<8x128xf32>
    %537 = arith.addf %534, %536 : vector<8x128xf32>
    %538 = vector.broadcast %14 : f32 to vector<8x128xf32>
    %539 = arith.mulf %538, %520 : vector<8x128xf32>
    %540 = arith.addf %537, %539 : vector<8x128xf32>
    %541 = vector.broadcast %19 : f32 to vector<8x128xf32>
    %542 = arith.addf %540, %541 : vector<8x128xf32>
    %cst_93 = arith.constant 0.000000e+00 : f32
    %543 = vector.broadcast %cst_93 : f32 to vector<8x128xf32>
    %544 = arith.maximumf %542, %543 : vector<8x128xf32>
    %545 = vector.broadcast %15 : f32 to vector<8x128xf32>
    %546 = arith.mulf %545, %502 : vector<8x128xf32>
    %547 = vector.broadcast %16 : f32 to vector<8x128xf32>
    %548 = arith.mulf %547, %511 : vector<8x128xf32>
    %549 = arith.addf %546, %548 : vector<8x128xf32>
    %550 = vector.broadcast %17 : f32 to vector<8x128xf32>
    %551 = arith.mulf %550, %520 : vector<8x128xf32>
    %552 = arith.addf %549, %551 : vector<8x128xf32>
    %553 = vector.broadcast %20 : f32 to vector<8x128xf32>
    %554 = arith.addf %552, %553 : vector<8x128xf32>
    %cst_94 = arith.constant 0.000000e+00 : f32
    %555 = vector.broadcast %cst_94 : f32 to vector<8x128xf32>
    %556 = arith.maximumf %554, %555 : vector<8x128xf32>
    %c25 = arith.constant 25 : index
    %557 = memref.load %arg1[%c25] : memref<128xf32, #tpu.memory_space<smem>>
    %c26 = arith.constant 26 : index
    %558 = memref.load %arg1[%c26] : memref<128xf32, #tpu.memory_space<smem>>
    %559 = vector.broadcast %557 : f32 to vector<8x128xf32>
    %560 = arith.mulf %559, %63 : vector<8x128xf32>
    %561 = vector.broadcast %558 : f32 to vector<8x128xf32>
    %562 = arith.mulf %561, %75 : vector<8x128xf32>
    %563 = arith.addf %560, %562 : vector<8x128xf32>
    %564 = vector.broadcast %557 : f32 to vector<8x128xf32>
    %565 = arith.mulf %564, %75 : vector<8x128xf32>
    %566 = vector.broadcast %558 : f32 to vector<8x128xf32>
    %567 = arith.mulf %566, %87 : vector<8x128xf32>
    %568 = arith.addf %565, %567 : vector<8x128xf32>
    %c27 = arith.constant 27 : index
    %569 = memref.load %arg1[%c27] : memref<128xf32, #tpu.memory_space<smem>>
    %c28 = arith.constant 28 : index
    %570 = memref.load %arg1[%c28] : memref<128xf32, #tpu.memory_space<smem>>
    %571 = vector.broadcast %569 : f32 to vector<8x128xf32>
    %572 = arith.mulf %571, %331 : vector<8x128xf32>
    %573 = vector.broadcast %570 : f32 to vector<8x128xf32>
    %574 = arith.mulf %573, %343 : vector<8x128xf32>
    %575 = arith.addf %572, %574 : vector<8x128xf32>
    %576 = vector.broadcast %569 : f32 to vector<8x128xf32>
    %577 = arith.mulf %576, %343 : vector<8x128xf32>
    %578 = vector.broadcast %570 : f32 to vector<8x128xf32>
    %579 = arith.mulf %578, %355 : vector<8x128xf32>
    %580 = arith.addf %577, %579 : vector<8x128xf32>
    %581 = arith.addf %563, %575 : vector<8x128xf32>
    %582 = arith.addf %568, %580 : vector<8x128xf32>
    %c29 = arith.constant 29 : index
    %583 = memref.load %arg1[%c29] : memref<128xf32, #tpu.memory_space<smem>>
    %c30 = arith.constant 30 : index
    %584 = memref.load %arg1[%c30] : memref<128xf32, #tpu.memory_space<smem>>
    %585 = vector.broadcast %583 : f32 to vector<8x128xf32>
    %586 = arith.mulf %585, %130 : vector<8x128xf32>
    %587 = vector.broadcast %584 : f32 to vector<8x128xf32>
    %588 = arith.mulf %587, %142 : vector<8x128xf32>
    %589 = arith.addf %586, %588 : vector<8x128xf32>
    %590 = vector.broadcast %583 : f32 to vector<8x128xf32>
    %591 = arith.mulf %590, %142 : vector<8x128xf32>
    %592 = vector.broadcast %584 : f32 to vector<8x128xf32>
    %593 = arith.mulf %592, %154 : vector<8x128xf32>
    %594 = arith.addf %591, %593 : vector<8x128xf32>
    %595 = arith.addf %581, %589 : vector<8x128xf32>
    %596 = arith.addf %582, %594 : vector<8x128xf32>
    %c31 = arith.constant 31 : index
    %597 = memref.load %arg1[%c31] : memref<128xf32, #tpu.memory_space<smem>>
    %c32 = arith.constant 32 : index
    %598 = memref.load %arg1[%c32] : memref<128xf32, #tpu.memory_space<smem>>
    %599 = vector.broadcast %597 : f32 to vector<8x128xf32>
    %600 = arith.mulf %599, %398 : vector<8x128xf32>
    %601 = vector.broadcast %598 : f32 to vector<8x128xf32>
    %602 = arith.mulf %601, %410 : vector<8x128xf32>
    %603 = arith.addf %600, %602 : vector<8x128xf32>
    %604 = vector.broadcast %597 : f32 to vector<8x128xf32>
    %605 = arith.mulf %604, %410 : vector<8x128xf32>
    %606 = vector.broadcast %598 : f32 to vector<8x128xf32>
    %607 = arith.mulf %606, %422 : vector<8x128xf32>
    %608 = arith.addf %605, %607 : vector<8x128xf32>
    %609 = arith.addf %595, %603 : vector<8x128xf32>
    %610 = arith.addf %596, %608 : vector<8x128xf32>
    %c33 = arith.constant 33 : index
    %611 = memref.load %arg1[%c33] : memref<128xf32, #tpu.memory_space<smem>>
    %c34 = arith.constant 34 : index
    %612 = memref.load %arg1[%c34] : memref<128xf32, #tpu.memory_space<smem>>
    %613 = vector.broadcast %611 : f32 to vector<8x128xf32>
    %614 = arith.mulf %613, %197 : vector<8x128xf32>
    %615 = vector.broadcast %612 : f32 to vector<8x128xf32>
    %616 = arith.mulf %615, %209 : vector<8x128xf32>
    %617 = arith.addf %614, %616 : vector<8x128xf32>
    %618 = vector.broadcast %611 : f32 to vector<8x128xf32>
    %619 = arith.mulf %618, %209 : vector<8x128xf32>
    %620 = vector.broadcast %612 : f32 to vector<8x128xf32>
    %621 = arith.mulf %620, %221 : vector<8x128xf32>
    %622 = arith.addf %619, %621 : vector<8x128xf32>
    %623 = arith.addf %609, %617 : vector<8x128xf32>
    %624 = arith.addf %610, %622 : vector<8x128xf32>
    %c35 = arith.constant 35 : index
    %625 = memref.load %arg1[%c35] : memref<128xf32, #tpu.memory_space<smem>>
    %c36 = arith.constant 36 : index
    %626 = memref.load %arg1[%c36] : memref<128xf32, #tpu.memory_space<smem>>
    %627 = vector.broadcast %625 : f32 to vector<8x128xf32>
    %628 = arith.mulf %627, %465 : vector<8x128xf32>
    %629 = vector.broadcast %626 : f32 to vector<8x128xf32>
    %630 = arith.mulf %629, %477 : vector<8x128xf32>
    %631 = arith.addf %628, %630 : vector<8x128xf32>
    %632 = vector.broadcast %625 : f32 to vector<8x128xf32>
    %633 = arith.mulf %632, %477 : vector<8x128xf32>
    %634 = vector.broadcast %626 : f32 to vector<8x128xf32>
    %635 = arith.mulf %634, %489 : vector<8x128xf32>
    %636 = arith.addf %633, %635 : vector<8x128xf32>
    %637 = arith.addf %623, %631 : vector<8x128xf32>
    %638 = arith.addf %624, %636 : vector<8x128xf32>
    %c37 = arith.constant 37 : index
    %639 = memref.load %arg1[%c37] : memref<128xf32, #tpu.memory_space<smem>>
    %c38 = arith.constant 38 : index
    %640 = memref.load %arg1[%c38] : memref<128xf32, #tpu.memory_space<smem>>
    %641 = vector.broadcast %639 : f32 to vector<8x128xf32>
    %642 = arith.mulf %641, %264 : vector<8x128xf32>
    %643 = vector.broadcast %640 : f32 to vector<8x128xf32>
    %644 = arith.mulf %643, %276 : vector<8x128xf32>
    %645 = arith.addf %642, %644 : vector<8x128xf32>
    %646 = vector.broadcast %639 : f32 to vector<8x128xf32>
    %647 = arith.mulf %646, %276 : vector<8x128xf32>
    %648 = vector.broadcast %640 : f32 to vector<8x128xf32>
    %649 = arith.mulf %648, %288 : vector<8x128xf32>
    %650 = arith.addf %647, %649 : vector<8x128xf32>
    %651 = arith.addf %637, %645 : vector<8x128xf32>
    %652 = arith.addf %638, %650 : vector<8x128xf32>
    %c39 = arith.constant 39 : index
    %653 = memref.load %arg1[%c39] : memref<128xf32, #tpu.memory_space<smem>>
    %c40 = arith.constant 40 : index
    %654 = memref.load %arg1[%c40] : memref<128xf32, #tpu.memory_space<smem>>
    %655 = vector.broadcast %653 : f32 to vector<8x128xf32>
    %656 = arith.mulf %655, %532 : vector<8x128xf32>
    %657 = vector.broadcast %654 : f32 to vector<8x128xf32>
    %658 = arith.mulf %657, %544 : vector<8x128xf32>
    %659 = arith.addf %656, %658 : vector<8x128xf32>
    %660 = vector.broadcast %653 : f32 to vector<8x128xf32>
    %661 = arith.mulf %660, %544 : vector<8x128xf32>
    %662 = vector.broadcast %654 : f32 to vector<8x128xf32>
    %663 = arith.mulf %662, %556 : vector<8x128xf32>
    %664 = arith.addf %661, %663 : vector<8x128xf32>
    %665 = arith.addf %651, %659 : vector<8x128xf32>
    %666 = arith.addf %652, %664 : vector<8x128xf32>
    %c89 = arith.constant 89 : index
    %667 = memref.load %arg1[%c89] : memref<128xf32, #tpu.memory_space<smem>>
    %668 = arith.maximumf %665, %666 : vector<8x128xf32>
    %669 = vector.broadcast %667 : f32 to vector<8x128xf32>
    %670 = arith.addf %668, %669 : vector<8x128xf32>
    %cst_95 = arith.constant 0.000000e+00 : f32
    %671 = vector.broadcast %cst_95 : f32 to vector<8x128xf32>
    %672 = arith.maximumf %670, %671 : vector<8x128xf32>
    %673 = vector.extract_strided_slice %672 {offsets = [1, 0], sizes = [7, 128], strides = [1, 1]} : vector<8x128xf32> to vector<7x128xf32>
    %674 = vector.extract_strided_slice %672 {offsets = [0, 0], sizes = [1, 128], strides = [1, 1]} : vector<8x128xf32> to vector<1x128xf32>
    %675 = tpu.concatenate %673, %674 in 0 : vector<7x128xf32>, vector<1x128xf32> -> vector<8x128xf32>
    %676 = arith.maximumf %672, %675 : vector<8x128xf32>
    %c41 = arith.constant 41 : index
    %677 = memref.load %arg1[%c41] : memref<128xf32, #tpu.memory_space<smem>>
    %c42 = arith.constant 42 : index
    %678 = memref.load %arg1[%c42] : memref<128xf32, #tpu.memory_space<smem>>
    %679 = vector.broadcast %677 : f32 to vector<8x128xf32>
    %680 = arith.mulf %679, %63 : vector<8x128xf32>
    %681 = vector.broadcast %678 : f32 to vector<8x128xf32>
    %682 = arith.mulf %681, %75 : vector<8x128xf32>
    %683 = arith.addf %680, %682 : vector<8x128xf32>
    %684 = vector.broadcast %677 : f32 to vector<8x128xf32>
    %685 = arith.mulf %684, %75 : vector<8x128xf32>
    %686 = vector.broadcast %678 : f32 to vector<8x128xf32>
    %687 = arith.mulf %686, %87 : vector<8x128xf32>
    %688 = arith.addf %685, %687 : vector<8x128xf32>
    %c43 = arith.constant 43 : index
    %689 = memref.load %arg1[%c43] : memref<128xf32, #tpu.memory_space<smem>>
    %c44 = arith.constant 44 : index
    %690 = memref.load %arg1[%c44] : memref<128xf32, #tpu.memory_space<smem>>
    %691 = vector.broadcast %689 : f32 to vector<8x128xf32>
    %692 = arith.mulf %691, %331 : vector<8x128xf32>
    %693 = vector.broadcast %690 : f32 to vector<8x128xf32>
    %694 = arith.mulf %693, %343 : vector<8x128xf32>
    %695 = arith.addf %692, %694 : vector<8x128xf32>
    %696 = vector.broadcast %689 : f32 to vector<8x128xf32>
    %697 = arith.mulf %696, %343 : vector<8x128xf32>
    %698 = vector.broadcast %690 : f32 to vector<8x128xf32>
    %699 = arith.mulf %698, %355 : vector<8x128xf32>
    %700 = arith.addf %697, %699 : vector<8x128xf32>
    %701 = arith.addf %683, %695 : vector<8x128xf32>
    %702 = arith.addf %688, %700 : vector<8x128xf32>
    %c45 = arith.constant 45 : index
    %703 = memref.load %arg1[%c45] : memref<128xf32, #tpu.memory_space<smem>>
    %c46 = arith.constant 46 : index
    %704 = memref.load %arg1[%c46] : memref<128xf32, #tpu.memory_space<smem>>
    %705 = vector.broadcast %703 : f32 to vector<8x128xf32>
    %706 = arith.mulf %705, %130 : vector<8x128xf32>
    %707 = vector.broadcast %704 : f32 to vector<8x128xf32>
    %708 = arith.mulf %707, %142 : vector<8x128xf32>
    %709 = arith.addf %706, %708 : vector<8x128xf32>
    %710 = vector.broadcast %703 : f32 to vector<8x128xf32>
    %711 = arith.mulf %710, %142 : vector<8x128xf32>
    %712 = vector.broadcast %704 : f32 to vector<8x128xf32>
    %713 = arith.mulf %712, %154 : vector<8x128xf32>
    %714 = arith.addf %711, %713 : vector<8x128xf32>
    %715 = arith.addf %701, %709 : vector<8x128xf32>
    %716 = arith.addf %702, %714 : vector<8x128xf32>
    %c47 = arith.constant 47 : index
    %717 = memref.load %arg1[%c47] : memref<128xf32, #tpu.memory_space<smem>>
    %c48 = arith.constant 48 : index
    %718 = memref.load %arg1[%c48] : memref<128xf32, #tpu.memory_space<smem>>
    %719 = vector.broadcast %717 : f32 to vector<8x128xf32>
    %720 = arith.mulf %719, %398 : vector<8x128xf32>
    %721 = vector.broadcast %718 : f32 to vector<8x128xf32>
    %722 = arith.mulf %721, %410 : vector<8x128xf32>
    %723 = arith.addf %720, %722 : vector<8x128xf32>
    %724 = vector.broadcast %717 : f32 to vector<8x128xf32>
    %725 = arith.mulf %724, %410 : vector<8x128xf32>
    %726 = vector.broadcast %718 : f32 to vector<8x128xf32>
    %727 = arith.mulf %726, %422 : vector<8x128xf32>
    %728 = arith.addf %725, %727 : vector<8x128xf32>
    %729 = arith.addf %715, %723 : vector<8x128xf32>
    %730 = arith.addf %716, %728 : vector<8x128xf32>
    %c49 = arith.constant 49 : index
    %731 = memref.load %arg1[%c49] : memref<128xf32, #tpu.memory_space<smem>>
    %c50 = arith.constant 50 : index
    %732 = memref.load %arg1[%c50] : memref<128xf32, #tpu.memory_space<smem>>
    %733 = vector.broadcast %731 : f32 to vector<8x128xf32>
    %734 = arith.mulf %733, %197 : vector<8x128xf32>
    %735 = vector.broadcast %732 : f32 to vector<8x128xf32>
    %736 = arith.mulf %735, %209 : vector<8x128xf32>
    %737 = arith.addf %734, %736 : vector<8x128xf32>
    %738 = vector.broadcast %731 : f32 to vector<8x128xf32>
    %739 = arith.mulf %738, %209 : vector<8x128xf32>
    %740 = vector.broadcast %732 : f32 to vector<8x128xf32>
    %741 = arith.mulf %740, %221 : vector<8x128xf32>
    %742 = arith.addf %739, %741 : vector<8x128xf32>
    %743 = arith.addf %729, %737 : vector<8x128xf32>
    %744 = arith.addf %730, %742 : vector<8x128xf32>
    %c51 = arith.constant 51 : index
    %745 = memref.load %arg1[%c51] : memref<128xf32, #tpu.memory_space<smem>>
    %c52 = arith.constant 52 : index
    %746 = memref.load %arg1[%c52] : memref<128xf32, #tpu.memory_space<smem>>
    %747 = vector.broadcast %745 : f32 to vector<8x128xf32>
    %748 = arith.mulf %747, %465 : vector<8x128xf32>
    %749 = vector.broadcast %746 : f32 to vector<8x128xf32>
    %750 = arith.mulf %749, %477 : vector<8x128xf32>
    %751 = arith.addf %748, %750 : vector<8x128xf32>
    %752 = vector.broadcast %745 : f32 to vector<8x128xf32>
    %753 = arith.mulf %752, %477 : vector<8x128xf32>
    %754 = vector.broadcast %746 : f32 to vector<8x128xf32>
    %755 = arith.mulf %754, %489 : vector<8x128xf32>
    %756 = arith.addf %753, %755 : vector<8x128xf32>
    %757 = arith.addf %743, %751 : vector<8x128xf32>
    %758 = arith.addf %744, %756 : vector<8x128xf32>
    %c53 = arith.constant 53 : index
    %759 = memref.load %arg1[%c53] : memref<128xf32, #tpu.memory_space<smem>>
    %c54 = arith.constant 54 : index
    %760 = memref.load %arg1[%c54] : memref<128xf32, #tpu.memory_space<smem>>
    %761 = vector.broadcast %759 : f32 to vector<8x128xf32>
    %762 = arith.mulf %761, %264 : vector<8x128xf32>
    %763 = vector.broadcast %760 : f32 to vector<8x128xf32>
    %764 = arith.mulf %763, %276 : vector<8x128xf32>
    %765 = arith.addf %762, %764 : vector<8x128xf32>
    %766 = vector.broadcast %759 : f32 to vector<8x128xf32>
    %767 = arith.mulf %766, %276 : vector<8x128xf32>
    %768 = vector.broadcast %760 : f32 to vector<8x128xf32>
    %769 = arith.mulf %768, %288 : vector<8x128xf32>
    %770 = arith.addf %767, %769 : vector<8x128xf32>
    %771 = arith.addf %757, %765 : vector<8x128xf32>
    %772 = arith.addf %758, %770 : vector<8x128xf32>
    %c55 = arith.constant 55 : index
    %773 = memref.load %arg1[%c55] : memref<128xf32, #tpu.memory_space<smem>>
    %c56 = arith.constant 56 : index
    %774 = memref.load %arg1[%c56] : memref<128xf32, #tpu.memory_space<smem>>
    %775 = vector.broadcast %773 : f32 to vector<8x128xf32>
    %776 = arith.mulf %775, %532 : vector<8x128xf32>
    %777 = vector.broadcast %774 : f32 to vector<8x128xf32>
    %778 = arith.mulf %777, %544 : vector<8x128xf32>
    %779 = arith.addf %776, %778 : vector<8x128xf32>
    %780 = vector.broadcast %773 : f32 to vector<8x128xf32>
    %781 = arith.mulf %780, %544 : vector<8x128xf32>
    %782 = vector.broadcast %774 : f32 to vector<8x128xf32>
    %783 = arith.mulf %782, %556 : vector<8x128xf32>
    %784 = arith.addf %781, %783 : vector<8x128xf32>
    %785 = arith.addf %771, %779 : vector<8x128xf32>
    %786 = arith.addf %772, %784 : vector<8x128xf32>
    %c90 = arith.constant 90 : index
    %787 = memref.load %arg1[%c90] : memref<128xf32, #tpu.memory_space<smem>>
    %788 = arith.maximumf %785, %786 : vector<8x128xf32>
    %789 = vector.broadcast %787 : f32 to vector<8x128xf32>
    %790 = arith.addf %788, %789 : vector<8x128xf32>
    %cst_96 = arith.constant 0.000000e+00 : f32
    %791 = vector.broadcast %cst_96 : f32 to vector<8x128xf32>
    %792 = arith.maximumf %790, %791 : vector<8x128xf32>
    %793 = vector.extract_strided_slice %792 {offsets = [1, 0], sizes = [7, 128], strides = [1, 1]} : vector<8x128xf32> to vector<7x128xf32>
    %794 = vector.extract_strided_slice %792 {offsets = [0, 0], sizes = [1, 128], strides = [1, 1]} : vector<8x128xf32> to vector<1x128xf32>
    %795 = tpu.concatenate %793, %794 in 0 : vector<7x128xf32>, vector<1x128xf32> -> vector<8x128xf32>
    %796 = arith.maximumf %792, %795 : vector<8x128xf32>
    %c57 = arith.constant 57 : index
    %797 = memref.load %arg1[%c57] : memref<128xf32, #tpu.memory_space<smem>>
    %c58 = arith.constant 58 : index
    %798 = memref.load %arg1[%c58] : memref<128xf32, #tpu.memory_space<smem>>
    %799 = vector.broadcast %797 : f32 to vector<8x128xf32>
    %800 = arith.mulf %799, %63 : vector<8x128xf32>
    %801 = vector.broadcast %798 : f32 to vector<8x128xf32>
    %802 = arith.mulf %801, %75 : vector<8x128xf32>
    %803 = arith.addf %800, %802 : vector<8x128xf32>
    %804 = vector.broadcast %797 : f32 to vector<8x128xf32>
    %805 = arith.mulf %804, %75 : vector<8x128xf32>
    %806 = vector.broadcast %798 : f32 to vector<8x128xf32>
    %807 = arith.mulf %806, %87 : vector<8x128xf32>
    %808 = arith.addf %805, %807 : vector<8x128xf32>
    %c59 = arith.constant 59 : index
    %809 = memref.load %arg1[%c59] : memref<128xf32, #tpu.memory_space<smem>>
    %c60 = arith.constant 60 : index
    %810 = memref.load %arg1[%c60] : memref<128xf32, #tpu.memory_space<smem>>
    %811 = vector.broadcast %809 : f32 to vector<8x128xf32>
    %812 = arith.mulf %811, %331 : vector<8x128xf32>
    %813 = vector.broadcast %810 : f32 to vector<8x128xf32>
    %814 = arith.mulf %813, %343 : vector<8x128xf32>
    %815 = arith.addf %812, %814 : vector<8x128xf32>
    %816 = vector.broadcast %809 : f32 to vector<8x128xf32>
    %817 = arith.mulf %816, %343 : vector<8x128xf32>
    %818 = vector.broadcast %810 : f32 to vector<8x128xf32>
    %819 = arith.mulf %818, %355 : vector<8x128xf32>
    %820 = arith.addf %817, %819 : vector<8x128xf32>
    %821 = arith.addf %803, %815 : vector<8x128xf32>
    %822 = arith.addf %808, %820 : vector<8x128xf32>
    %c61 = arith.constant 61 : index
    %823 = memref.load %arg1[%c61] : memref<128xf32, #tpu.memory_space<smem>>
    %c62 = arith.constant 62 : index
    %824 = memref.load %arg1[%c62] : memref<128xf32, #tpu.memory_space<smem>>
    %825 = vector.broadcast %823 : f32 to vector<8x128xf32>
    %826 = arith.mulf %825, %130 : vector<8x128xf32>
    %827 = vector.broadcast %824 : f32 to vector<8x128xf32>
    %828 = arith.mulf %827, %142 : vector<8x128xf32>
    %829 = arith.addf %826, %828 : vector<8x128xf32>
    %830 = vector.broadcast %823 : f32 to vector<8x128xf32>
    %831 = arith.mulf %830, %142 : vector<8x128xf32>
    %832 = vector.broadcast %824 : f32 to vector<8x128xf32>
    %833 = arith.mulf %832, %154 : vector<8x128xf32>
    %834 = arith.addf %831, %833 : vector<8x128xf32>
    %835 = arith.addf %821, %829 : vector<8x128xf32>
    %836 = arith.addf %822, %834 : vector<8x128xf32>
    %c63 = arith.constant 63 : index
    %837 = memref.load %arg1[%c63] : memref<128xf32, #tpu.memory_space<smem>>
    %c64 = arith.constant 64 : index
    %838 = memref.load %arg1[%c64] : memref<128xf32, #tpu.memory_space<smem>>
    %839 = vector.broadcast %837 : f32 to vector<8x128xf32>
    %840 = arith.mulf %839, %398 : vector<8x128xf32>
    %841 = vector.broadcast %838 : f32 to vector<8x128xf32>
    %842 = arith.mulf %841, %410 : vector<8x128xf32>
    %843 = arith.addf %840, %842 : vector<8x128xf32>
    %844 = vector.broadcast %837 : f32 to vector<8x128xf32>
    %845 = arith.mulf %844, %410 : vector<8x128xf32>
    %846 = vector.broadcast %838 : f32 to vector<8x128xf32>
    %847 = arith.mulf %846, %422 : vector<8x128xf32>
    %848 = arith.addf %845, %847 : vector<8x128xf32>
    %849 = arith.addf %835, %843 : vector<8x128xf32>
    %850 = arith.addf %836, %848 : vector<8x128xf32>
    %c65 = arith.constant 65 : index
    %851 = memref.load %arg1[%c65] : memref<128xf32, #tpu.memory_space<smem>>
    %c66 = arith.constant 66 : index
    %852 = memref.load %arg1[%c66] : memref<128xf32, #tpu.memory_space<smem>>
    %853 = vector.broadcast %851 : f32 to vector<8x128xf32>
    %854 = arith.mulf %853, %197 : vector<8x128xf32>
    %855 = vector.broadcast %852 : f32 to vector<8x128xf32>
    %856 = arith.mulf %855, %209 : vector<8x128xf32>
    %857 = arith.addf %854, %856 : vector<8x128xf32>
    %858 = vector.broadcast %851 : f32 to vector<8x128xf32>
    %859 = arith.mulf %858, %209 : vector<8x128xf32>
    %860 = vector.broadcast %852 : f32 to vector<8x128xf32>
    %861 = arith.mulf %860, %221 : vector<8x128xf32>
    %862 = arith.addf %859, %861 : vector<8x128xf32>
    %863 = arith.addf %849, %857 : vector<8x128xf32>
    %864 = arith.addf %850, %862 : vector<8x128xf32>
    %c67 = arith.constant 67 : index
    %865 = memref.load %arg1[%c67] : memref<128xf32, #tpu.memory_space<smem>>
    %c68 = arith.constant 68 : index
    %866 = memref.load %arg1[%c68] : memref<128xf32, #tpu.memory_space<smem>>
    %867 = vector.broadcast %865 : f32 to vector<8x128xf32>
    %868 = arith.mulf %867, %465 : vector<8x128xf32>
    %869 = vector.broadcast %866 : f32 to vector<8x128xf32>
    %870 = arith.mulf %869, %477 : vector<8x128xf32>
    %871 = arith.addf %868, %870 : vector<8x128xf32>
    %872 = vector.broadcast %865 : f32 to vector<8x128xf32>
    %873 = arith.mulf %872, %477 : vector<8x128xf32>
    %874 = vector.broadcast %866 : f32 to vector<8x128xf32>
    %875 = arith.mulf %874, %489 : vector<8x128xf32>
    %876 = arith.addf %873, %875 : vector<8x128xf32>
    %877 = arith.addf %863, %871 : vector<8x128xf32>
    %878 = arith.addf %864, %876 : vector<8x128xf32>
    %c69 = arith.constant 69 : index
    %879 = memref.load %arg1[%c69] : memref<128xf32, #tpu.memory_space<smem>>
    %c70 = arith.constant 70 : index
    %880 = memref.load %arg1[%c70] : memref<128xf32, #tpu.memory_space<smem>>
    %881 = vector.broadcast %879 : f32 to vector<8x128xf32>
    %882 = arith.mulf %881, %264 : vector<8x128xf32>
    %883 = vector.broadcast %880 : f32 to vector<8x128xf32>
    %884 = arith.mulf %883, %276 : vector<8x128xf32>
    %885 = arith.addf %882, %884 : vector<8x128xf32>
    %886 = vector.broadcast %879 : f32 to vector<8x128xf32>
    %887 = arith.mulf %886, %276 : vector<8x128xf32>
    %888 = vector.broadcast %880 : f32 to vector<8x128xf32>
    %889 = arith.mulf %888, %288 : vector<8x128xf32>
    %890 = arith.addf %887, %889 : vector<8x128xf32>
    %891 = arith.addf %877, %885 : vector<8x128xf32>
    %892 = arith.addf %878, %890 : vector<8x128xf32>
    %c71 = arith.constant 71 : index
    %893 = memref.load %arg1[%c71] : memref<128xf32, #tpu.memory_space<smem>>
    %c72 = arith.constant 72 : index
    %894 = memref.load %arg1[%c72] : memref<128xf32, #tpu.memory_space<smem>>
    %895 = vector.broadcast %893 : f32 to vector<8x128xf32>
    %896 = arith.mulf %895, %532 : vector<8x128xf32>
    %897 = vector.broadcast %894 : f32 to vector<8x128xf32>
    %898 = arith.mulf %897, %544 : vector<8x128xf32>
    %899 = arith.addf %896, %898 : vector<8x128xf32>
    %900 = vector.broadcast %893 : f32 to vector<8x128xf32>
    %901 = arith.mulf %900, %544 : vector<8x128xf32>
    %902 = vector.broadcast %894 : f32 to vector<8x128xf32>
    %903 = arith.mulf %902, %556 : vector<8x128xf32>
    %904 = arith.addf %901, %903 : vector<8x128xf32>
    %905 = arith.addf %891, %899 : vector<8x128xf32>
    %906 = arith.addf %892, %904 : vector<8x128xf32>
    %c91 = arith.constant 91 : index
    %907 = memref.load %arg1[%c91] : memref<128xf32, #tpu.memory_space<smem>>
    %908 = arith.maximumf %905, %906 : vector<8x128xf32>
    %909 = vector.broadcast %907 : f32 to vector<8x128xf32>
    %910 = arith.addf %908, %909 : vector<8x128xf32>
    %cst_97 = arith.constant 0.000000e+00 : f32
    %911 = vector.broadcast %cst_97 : f32 to vector<8x128xf32>
    %912 = arith.maximumf %910, %911 : vector<8x128xf32>
    %913 = vector.extract_strided_slice %912 {offsets = [1, 0], sizes = [7, 128], strides = [1, 1]} : vector<8x128xf32> to vector<7x128xf32>
    %914 = vector.extract_strided_slice %912 {offsets = [0, 0], sizes = [1, 128], strides = [1, 1]} : vector<8x128xf32> to vector<1x128xf32>
    %915 = tpu.concatenate %913, %914 in 0 : vector<7x128xf32>, vector<1x128xf32> -> vector<8x128xf32>
    %916 = arith.maximumf %912, %915 : vector<8x128xf32>
    %c73 = arith.constant 73 : index
    %917 = memref.load %arg1[%c73] : memref<128xf32, #tpu.memory_space<smem>>
    %c74 = arith.constant 74 : index
    %918 = memref.load %arg1[%c74] : memref<128xf32, #tpu.memory_space<smem>>
    %919 = vector.broadcast %917 : f32 to vector<8x128xf32>
    %920 = arith.mulf %919, %63 : vector<8x128xf32>
    %921 = vector.broadcast %918 : f32 to vector<8x128xf32>
    %922 = arith.mulf %921, %75 : vector<8x128xf32>
    %923 = arith.addf %920, %922 : vector<8x128xf32>
    %924 = vector.broadcast %917 : f32 to vector<8x128xf32>
    %925 = arith.mulf %924, %75 : vector<8x128xf32>
    %926 = vector.broadcast %918 : f32 to vector<8x128xf32>
    %927 = arith.mulf %926, %87 : vector<8x128xf32>
    %928 = arith.addf %925, %927 : vector<8x128xf32>
    %c75 = arith.constant 75 : index
    %929 = memref.load %arg1[%c75] : memref<128xf32, #tpu.memory_space<smem>>
    %c76 = arith.constant 76 : index
    %930 = memref.load %arg1[%c76] : memref<128xf32, #tpu.memory_space<smem>>
    %931 = vector.broadcast %929 : f32 to vector<8x128xf32>
    %932 = arith.mulf %931, %331 : vector<8x128xf32>
    %933 = vector.broadcast %930 : f32 to vector<8x128xf32>
    %934 = arith.mulf %933, %343 : vector<8x128xf32>
    %935 = arith.addf %932, %934 : vector<8x128xf32>
    %936 = vector.broadcast %929 : f32 to vector<8x128xf32>
    %937 = arith.mulf %936, %343 : vector<8x128xf32>
    %938 = vector.broadcast %930 : f32 to vector<8x128xf32>
    %939 = arith.mulf %938, %355 : vector<8x128xf32>
    %940 = arith.addf %937, %939 : vector<8x128xf32>
    %941 = arith.addf %923, %935 : vector<8x128xf32>
    %942 = arith.addf %928, %940 : vector<8x128xf32>
    %c77 = arith.constant 77 : index
    %943 = memref.load %arg1[%c77] : memref<128xf32, #tpu.memory_space<smem>>
    %c78 = arith.constant 78 : index
    %944 = memref.load %arg1[%c78] : memref<128xf32, #tpu.memory_space<smem>>
    %945 = vector.broadcast %943 : f32 to vector<8x128xf32>
    %946 = arith.mulf %945, %130 : vector<8x128xf32>
    %947 = vector.broadcast %944 : f32 to vector<8x128xf32>
    %948 = arith.mulf %947, %142 : vector<8x128xf32>
    %949 = arith.addf %946, %948 : vector<8x128xf32>
    %950 = vector.broadcast %943 : f32 to vector<8x128xf32>
    %951 = arith.mulf %950, %142 : vector<8x128xf32>
    %952 = vector.broadcast %944 : f32 to vector<8x128xf32>
    %953 = arith.mulf %952, %154 : vector<8x128xf32>
    %954 = arith.addf %951, %953 : vector<8x128xf32>
    %955 = arith.addf %941, %949 : vector<8x128xf32>
    %956 = arith.addf %942, %954 : vector<8x128xf32>
    %c79 = arith.constant 79 : index
    %957 = memref.load %arg1[%c79] : memref<128xf32, #tpu.memory_space<smem>>
    %c80 = arith.constant 80 : index
    %958 = memref.load %arg1[%c80] : memref<128xf32, #tpu.memory_space<smem>>
    %959 = vector.broadcast %957 : f32 to vector<8x128xf32>
    %960 = arith.mulf %959, %398 : vector<8x128xf32>
    %961 = vector.broadcast %958 : f32 to vector<8x128xf32>
    %962 = arith.mulf %961, %410 : vector<8x128xf32>
    %963 = arith.addf %960, %962 : vector<8x128xf32>
    %964 = vector.broadcast %957 : f32 to vector<8x128xf32>
    %965 = arith.mulf %964, %410 : vector<8x128xf32>
    %966 = vector.broadcast %958 : f32 to vector<8x128xf32>
    %967 = arith.mulf %966, %422 : vector<8x128xf32>
    %968 = arith.addf %965, %967 : vector<8x128xf32>
    %969 = arith.addf %955, %963 : vector<8x128xf32>
    %970 = arith.addf %956, %968 : vector<8x128xf32>
    %c81 = arith.constant 81 : index
    %971 = memref.load %arg1[%c81] : memref<128xf32, #tpu.memory_space<smem>>
    %c82 = arith.constant 82 : index
    %972 = memref.load %arg1[%c82] : memref<128xf32, #tpu.memory_space<smem>>
    %973 = vector.broadcast %971 : f32 to vector<8x128xf32>
    %974 = arith.mulf %973, %197 : vector<8x128xf32>
    %975 = vector.broadcast %972 : f32 to vector<8x128xf32>
    %976 = arith.mulf %975, %209 : vector<8x128xf32>
    %977 = arith.addf %974, %976 : vector<8x128xf32>
    %978 = vector.broadcast %971 : f32 to vector<8x128xf32>
    %979 = arith.mulf %978, %209 : vector<8x128xf32>
    %980 = vector.broadcast %972 : f32 to vector<8x128xf32>
    %981 = arith.mulf %980, %221 : vector<8x128xf32>
    %982 = arith.addf %979, %981 : vector<8x128xf32>
    %983 = arith.addf %969, %977 : vector<8x128xf32>
    %984 = arith.addf %970, %982 : vector<8x128xf32>
    %c83 = arith.constant 83 : index
    %985 = memref.load %arg1[%c83] : memref<128xf32, #tpu.memory_space<smem>>
    %c84 = arith.constant 84 : index
    %986 = memref.load %arg1[%c84] : memref<128xf32, #tpu.memory_space<smem>>
    %987 = vector.broadcast %985 : f32 to vector<8x128xf32>
    %988 = arith.mulf %987, %465 : vector<8x128xf32>
    %989 = vector.broadcast %986 : f32 to vector<8x128xf32>
    %990 = arith.mulf %989, %477 : vector<8x128xf32>
    %991 = arith.addf %988, %990 : vector<8x128xf32>
    %992 = vector.broadcast %985 : f32 to vector<8x128xf32>
    %993 = arith.mulf %992, %477 : vector<8x128xf32>
    %994 = vector.broadcast %986 : f32 to vector<8x128xf32>
    %995 = arith.mulf %994, %489 : vector<8x128xf32>
    %996 = arith.addf %993, %995 : vector<8x128xf32>
    %997 = arith.addf %983, %991 : vector<8x128xf32>
    %998 = arith.addf %984, %996 : vector<8x128xf32>
    %c85 = arith.constant 85 : index
    %999 = memref.load %arg1[%c85] : memref<128xf32, #tpu.memory_space<smem>>
    %c86 = arith.constant 86 : index
    %1000 = memref.load %arg1[%c86] : memref<128xf32, #tpu.memory_space<smem>>
    %1001 = vector.broadcast %999 : f32 to vector<8x128xf32>
    %1002 = arith.mulf %1001, %264 : vector<8x128xf32>
    %1003 = vector.broadcast %1000 : f32 to vector<8x128xf32>
    %1004 = arith.mulf %1003, %276 : vector<8x128xf32>
    %1005 = arith.addf %1002, %1004 : vector<8x128xf32>
    %1006 = vector.broadcast %999 : f32 to vector<8x128xf32>
    %1007 = arith.mulf %1006, %276 : vector<8x128xf32>
    %1008 = vector.broadcast %1000 : f32 to vector<8x128xf32>
    %1009 = arith.mulf %1008, %288 : vector<8x128xf32>
    %1010 = arith.addf %1007, %1009 : vector<8x128xf32>
    %1011 = arith.addf %997, %1005 : vector<8x128xf32>
    %1012 = arith.addf %998, %1010 : vector<8x128xf32>
    %c87 = arith.constant 87 : index
    %1013 = memref.load %arg1[%c87] : memref<128xf32, #tpu.memory_space<smem>>
    %c88 = arith.constant 88 : index
    %1014 = memref.load %arg1[%c88] : memref<128xf32, #tpu.memory_space<smem>>
    %1015 = vector.broadcast %1013 : f32 to vector<8x128xf32>
    %1016 = arith.mulf %1015, %532 : vector<8x128xf32>
    %1017 = vector.broadcast %1014 : f32 to vector<8x128xf32>
    %1018 = arith.mulf %1017, %544 : vector<8x128xf32>
    %1019 = arith.addf %1016, %1018 : vector<8x128xf32>
    %1020 = vector.broadcast %1013 : f32 to vector<8x128xf32>
    %1021 = arith.mulf %1020, %544 : vector<8x128xf32>
    %1022 = vector.broadcast %1014 : f32 to vector<8x128xf32>
    %1023 = arith.mulf %1022, %556 : vector<8x128xf32>
    %1024 = arith.addf %1021, %1023 : vector<8x128xf32>
    %1025 = arith.addf %1011, %1019 : vector<8x128xf32>
    %1026 = arith.addf %1012, %1024 : vector<8x128xf32>
    %c92 = arith.constant 92 : index
    %1027 = memref.load %arg1[%c92] : memref<128xf32, #tpu.memory_space<smem>>
    %1028 = arith.maximumf %1025, %1026 : vector<8x128xf32>
    %1029 = vector.broadcast %1027 : f32 to vector<8x128xf32>
    %1030 = arith.addf %1028, %1029 : vector<8x128xf32>
    %cst_98 = arith.constant 0.000000e+00 : f32
    %1031 = vector.broadcast %cst_98 : f32 to vector<8x128xf32>
    %1032 = arith.maximumf %1030, %1031 : vector<8x128xf32>
    %1033 = vector.extract_strided_slice %1032 {offsets = [1, 0], sizes = [7, 128], strides = [1, 1]} : vector<8x128xf32> to vector<7x128xf32>
    %1034 = vector.extract_strided_slice %1032 {offsets = [0, 0], sizes = [1, 128], strides = [1, 1]} : vector<8x128xf32> to vector<1x128xf32>
    %1035 = tpu.concatenate %1033, %1034 in 0 : vector<7x128xf32>, vector<1x128xf32> -> vector<8x128xf32>
    %1036 = arith.maximumf %1032, %1035 : vector<8x128xf32>
    %1037 = tpu.concatenate %676, %796, %916, %1036 in 0 : vector<8x128xf32>, vector<8x128xf32>, vector<8x128xf32>, vector<8x128xf32> -> vector<32x128xf32>
    %c0_99 = arith.constant 0 : index
    %c0_100 = arith.constant 0 : index
    %1038 = vector.load %arg3[%c0_99, %c0_100] : memref<24x32xf32, #tpu.memory_space<vmem>>, vector<24x32xf32>
    %cst_101 = arith.constant dense<0.000000e+00> : vector<24x128xf32>
    %1039 = tpu.matmul %1038, %1037, %cst_101 {dimension_numbers = #tpu.dot_dimension_numbers<[1], [0], [0], [1], [0, 0, 1, 1], [], []>} : vector<24x32xf32>, vector<32x128xf32>, vector<24x128xf32> -> vector<24x128xf32>
    %c0_102 = arith.constant 0 : index
    %c0_103 = arith.constant 0 : index
    %1040 = vector.load %arg4[%c0_102, %c0_103] : memref<24x1xf32, #tpu.memory_space<vmem>>, vector<24x1xf32>
    %1041 = vector.broadcast %1040 : vector<24x1xf32> to vector<24x128xf32>
    %1042 = arith.addf %1039, %1041 : vector<24x128xf32>
    %cst_104 = arith.constant 0.000000e+00 : f32
    %1043 = vector.broadcast %cst_104 : f32 to vector<24x128xf32>
    %1044 = arith.maximumf %1042, %1043 : vector<24x128xf32>
    %1045 = math.tanh %1044 : vector<24x128xf32>
    %c0_105 = arith.constant 0 : index
    %c0_106 = arith.constant 0 : index
    %1046 = vector.load %arg5[%c0_105, %c0_106] : memref<24x128xf32, #tpu.memory_space<vmem>>, vector<24x128xf32>
    tpu.vector_store %arg5[%c0_105, %c0_106], %1045 {strides = array<i32>} : memref<24x128xf32, #tpu.memory_space<vmem>>, vector<24x128xf32>,
    return
  }
  func.func @transform_0(%arg0: i32) -> i32 {
    %c0_i32 = arith.constant 0 : i32
    %c0_i32_0 = arith.constant 0 : i32
    return %c0_i32 : i32
  }
  func.func @transform_1(%arg0: i32) -> (i32, i32, i32) {
    %c0_i32 = arith.constant 0 : i32
    %c0_i32_0 = arith.constant 0 : i32
    %c0_i32_1 = arith.constant 0 : i32
    return %c0_i32, %c0_i32_0, %arg0 : i32, i32, i32
  }
  func.func @transform_2(%arg0: i32) -> (i32, i32) {
    %c0_i32 = arith.constant 0 : i32
    %c0_i32_0 = arith.constant 0 : i32
    %c0_i32_1 = arith.constant 0 : i32
    return %c0_i32, %c0_i32_0 : i32, i32
  }
  func.func @transform_3(%arg0: i32) -> (i32, i32) {
    %c0_i32 = arith.constant 0 : i32
    %c0_i32_0 = arith.constant 0 : i32
    %c0_i32_1 = arith.constant 0 : i32
    return %c0_i32, %c0_i32_0 : i32, i32
  }
  func.func @transform_4(%arg0: i32) -> (i32, i32) {
    %c0_i32 = arith.constant 0 : i32
    %c0_i32_0 = arith.constant 0 : i32
    return %c0_i32, %arg0 : i32, i32
  }
}

</mosaic_0001>

<bundles_post_ra>
// kernel: wgan_generator_forward.1
= control target key start
LH: loop header
LB: loop body
LE: loop exit
PB: predicated region body
PF: predicated region fallthrough
CT: control target
= control target key end

     0   :  { %9 = vsyncpa [#allocation3], 0  ;;  %s1589_s15 = smov 0   ;;  %s1591_s16 = smov 0   ;;  %s2364_s0 = inlined_call_operand.vmem [shape: f32[128], index: 0, kind: input, shape index: {}]   ;;  %s2365_s1 = inlined_call_operand.vmem [shape: f32[16,8,256], index: 1, kind: input, shape index: {}]   ;;  %s2366_s2 = inlined_call_operand.vmem [shape: f32[24,32], index: 2, kind: input, shape index: {}]   ;;  %s2367_s3 = inlined_call_operand.vmem [shape: f32[24,1], index: 3, kind: input, shape index: {}]   ;;  %s2368_s4 = inlined_call_operand.vmem [shape: f32[24,256], index: 4, kind: output, shape index: {}]  }
   0x1   :  { %s1593_s17 = smov 0  }
   0x2 LB: > { %s1605_s18 = sadd.s32 4294967295, %s1557_s17   ;;  %s1608_s19 = sadd.s32 1, %s1557_s17   ;;  %s1557_s17 = sphi %s1593_s17, %s2375_s17   ;;  %s1553_s16 = sphi %s1591_s16, %s2374_s16   ;;  %s1549_s15 = sphi %s1589_s15, %s2373_s15  }
   0x3   : > { %s40_s20 = ssub.s32 %s1557_s17, %s1608_s19  ;;  %s43_s21 = sadd.s32 1, %s1553_s16 }
   0x4   : > { %p41_p0 = scmp.eq.s32.totalorder %s40_s20, 0  ;;  %p50_p1 = scmp.ne.s32.totalorder %s1553_s16, %s1549_s15 }
   0x5   : > { %p51_p2 = scmp.eq.s32.totalorder %s1557_s17, 0  ;;  %p122_p3 = scmp.eq.s32.totalorder %s1605_s18, 1 }
   0x6   : > { %s1618_s22 = scalar_select %p41_p0, %s1553_s16, %s43_s21  }
   0x7   : > { %p1620_p4 = por %p51_p2, %p50_p1  ;;  %p1624_p5 = por %p122_p3, %p50_p1 }
   0x8   : > { %p1317_p6 = scmp.ge.s32.totalorder %s1557_s17, 1  ;;  %p135_p7 = scmp.lt.s32.totalorder %s1557_s17, 3 }
   0x9   : > { %s2370_s24 = scalar_select %p1624_p5, 1, 0 }
   0xa   : > { %p1477_p8 = scmp.eq.s32.totalorder %s1605_s18, 0  ;;  %p1631_p9 = pnand %p1317_p6, %p135_p7 }
   0xb   : > { %s148_s28 = sshll.u32 %s2364_s0, 4  ;;  %s149_s28 = int_to_ptr.vmem [resolvable:$true] %s148_s28 }
   0xc   : > { %p1473_p10 = pneg %p1631_p9  ;;  %s1516_s29 = scalar_lea.vmem %s149_s28, 16 }
   0xd   : > { %p1517_p12 = scmp.ne.s32.totalorder %s149_s28, %s1516_s29  ;;  %p1524_p2 = scmp.lt.s32.totalorder %s149_s28, %s149_s28 }
   0xe   : > { %p1474_p11 = pnand %p1477_p8, %p1473_p10  ;;  %p1525_p3 = scmp.lt.s32.totalorder %s1516_s29, %s1516_s29 }
  0x10   : > { %p1518_p13 = pneg %p1474_p11  ;;  %p1526_p6 = por %p1525_p3, %p1524_p2 }
  0x12   : > { %p1519_p0 = pnand %p1518_p13, %p1517_p12 }
  0x14   : > { %p1520_p1 = pneg %p1519_p0 }
  0x16   : > { %p1527_p7 = pnand %p1526_p6, %p1520_p1 }
  0x18   : > { %1530 = shalt.err (!%p1527_p7)
}
  0x19   : > { %s1559_s30 = smov [#allocation2]   ;;  %p1319_p5 = scmp.ge.s32.totalorder %s1557_s17, 2 }
  0x1a   : > { %1476 = dma.vmem_to_smem (!%p1474_p11), %s149_s28, 16, %s1559_s30, [#allocation3]  }
  0x1b   : > { %161 = sbr.rel (%p1319_p5) target bundleno = 46 (0x2e), region = 28 }
  0x22   : > { %164 = sbr.rel (!%p1620_p4) target bundleno = 46 (0x2e), region = 32  ;;  %s166_s5 = sand.u32 (%p1620_p4), 1, %s1553_s16  }
  0x23   : > { %s1321_s6 = sshll.u32 (%p1620_p4), %s1557_s17, 3  ;;  %s1320_s7 = sshll.u32 (%p1620_p4), %s166_s5, 7 }
  0x24   : > { %s1650_s10 = scalar_lea.vmem (%p1620_p4), %s2365_s1, %s1321_s6  ;;  %s168_s11 = scalar_lea.vmem (%p1620_p4), [#allocation4], %s1320_s7 }
  0x25   : > { %v228_v0 = vld [vmem:[%s1650_s10] sm:$0xff] (%p1620_p4)  ;;  %v230_v1 = vld [vmem:[%s1650_s10 + $0x10] sm:$0xff] (%p1620_p4) }
  0x26   : > { %v232_v2 = vld [vmem:[%s1650_s10 + $0x20] sm:$0xff] (%p1620_p4)  ;;  %229 = vst [vmem:[%s168_s11] sm:$0xff] (%p1620_p4), %v228_v0  ;;  %231 = vst [vmem:[%s168_s11 + $0x8] sm:$0xff] (%p1620_p4), %v230_v1  ;;  %v234_v3 = vld [vmem:[%s1650_s10 + $0x30] sm:$0xff] (%p1620_p4) }
  0x27   : > { %233 = vst [vmem:[%s168_s11 + $0x10] sm:$0xff] (%p1620_p4), %v232_v2  ;;  %v236_v4 = vld [vmem:[%s1650_s10 + $0x40] sm:$0xff] (%p1620_p4)  ;;  %v238_v5 = vld [vmem:[%s1650_s10 + $0x50] sm:$0xff] (%p1620_p4)  ;;  %235 = vst [vmem:[%s168_s11 + $0x18] sm:$0xff] (%p1620_p4), %v234_v3 }
  0x28   : > { %237 = vst [vmem:[%s168_s11 + $0x20] sm:$0xff] (%p1620_p4), %v236_v4  ;;  %239 = vst [vmem:[%s168_s11 + $0x28] sm:$0xff] (%p1620_p4), %v238_v5  ;;  %v240_v6 = vld [vmem:[%s1650_s10 + $0x60] sm:$0xff] (%p1620_p4)  ;;  %v242_v7 = vld [vmem:[%s1650_s10 + $0x70] sm:$0xff] (%p1620_p4) }
  0x29   : > { %v244_v8 = vld [vmem:[%s1650_s10 + $0x80] sm:$0xff]  ;;  %241 = vst [vmem:[%s168_s11 + $0x30] sm:$0xff] %v240_v6  ;;  %243 = vst [vmem:[%s168_s11 + $0x38] sm:$0xff] %v242_v7  ;;  %v246_v9 = vld [vmem:[%s1650_s10 + $0x90] sm:$0xff] }
  0x2a   : > { %245 = vst [vmem:[%s168_s11 + $0x40] sm:$0xff] %v244_v8  ;;  %v248_v10 = vld [vmem:[%s1650_s10 + $0xa0] sm:$0xff]  ;;  %v250_v11 = vld [vmem:[%s1650_s10 + $0xb0] sm:$0xff]  ;;  %247 = vst [vmem:[%s168_s11 + $0x48] sm:$0xff] %v246_v9 }
  0x2b   : > { %249 = vst [vmem:[%s168_s11 + $0x50] sm:$0xff] %v248_v10  ;;  %251 = vst [vmem:[%s168_s11 + $0x58] sm:$0xff] %v250_v11  ;;  %v252_v12 = vld [vmem:[%s1650_s10 + $0xc0] sm:$0xff]  ;;  %v254_v13 = vld [vmem:[%s1650_s10 + $0xd0] sm:$0xff] }
  0x2c   : > { %v256_v14 = vld [vmem:[%s1650_s10 + $0xe0] sm:$0xff]  ;;  %253 = vst [vmem:[%s168_s11 + $0x60] sm:$0xff] %v252_v12  ;;  %255 = vst [vmem:[%s168_s11 + $0x68] sm:$0xff] %v254_v13  ;;  %v258_v15 = vld [vmem:[%s1650_s10 + $0xf0] sm:$0xff] }
  0x2d   : > { %257 = vst [vmem:[%s168_s11 + $0x70] sm:$0xff] %v256_v14  ;;  %259 = vst [vmem:[%s168_s11 + $0x78] sm:$0xff] %v258_v15 }
  0x2e PF: > { %268 = sbr.rel (%p1631_p9) target bundleno = 483 (0x1e3), region = 70 }
  0x35   : > { %1544 = dma.done.wait (%p1477_p8), [#allocation3], 16  }
  0x36   : > { %1546 = vsyncadd (%p1477_p8), [#allocation3], 4294967280  ;;  %s275_s12 = sand.u32 1, %s1549_s15  }
  0x37   : > { %s1324_s13 = sshll.u32 %s275_s12, 7 }
  0x38   : > { %s1677_s14 = scalar_lea.vmem [#allocation4], %s1324_s13 }
  0x39   : > { %281 = sfence }
  0x3a   : > { %s300_s17 = sld [smem:[#allocation2]]  ;;  %s1325_s20 = sld [smem:[#allocation2 + $0x1]]  ;;  %v1560_v16 = vmov 0.0|0.0   ;;  %v321_v17 = vld [vmem:[%s1677_s14] sm:$0xff]  ;;  %v1345_v18 = vld [vmem:[%s1677_s14 + $0x8] sm:$0xff]  ;;  %v1346_v29 = vld [vmem:[%s1677_s14 + $0x10] sm:$0xff] }
  0x3b   : > { %1458 = vmatprep.subr.bf16.mxu0 %v1560_v16  ;;  %1464 = vmatprep.subr.bf16.mxu1 %v1560_v16  ;;  %s1326_s21 = sld [smem:[#allocation2 + $0x2]]  ;;  %s1327_s23 = sld [smem:[#allocation2 + $0x3]]  ;;  %v1347_v38 = vld [vmem:[%s1677_s14 + $0x18] sm:$0xff]  ;;  %v1348_v7 = vld [vmem:[%s1677_s14 + $0x20] sm:$0xff]  ;;  %v1349_v12 = vld [vmem:[%s1677_s14 + $0x28] sm:$0xff]  ;;  %vm1561_vm0 = vmmov 0  }
  0x3c   : > { %s1328_s25 = sld [smem:[#allocation2 + $0x4]]  ;;  %s1329_s26 = sld [smem:[#allocation2 + $0x5]]  ;;  %vm1099_vm1 = vcmask 261120  }
  0x3d   : > { %s1330_s27 = sld [smem:[#allocation2 + $0x6]]  ;;  %s1331_s28 = sld [smem:[#allocation2 + $0x7]] }
  0x3e   : > { %s1681_s29 = sld [smem:[#allocation2 + $0x8]]  ;;  %s1683_s30 = sld [smem:[#allocation2 + $0x9]] }
  0x3f   : > { %s1687_s5 = sld [smem:[#allocation2 + $0xa]]  ;;  %s1689_s6 = sld [smem:[#allocation2 + $0xb]] }
  0x40   : > { %s1691_s7 = sld [smem:[#allocation2 + $0xc]]  ;;  %s1693_s8 = sld [smem:[#allocation2 + $0xd]]  ;;  %v1695_v19 = vstv %s300_s17  ;;  %v1697_v20 = vstv %s1325_s20 }
  0x41   : > { %s1699_s9 = sld [smem:[#allocation2 + $0xe]]  ;;  %s1701_s10 = sld [smem:[#allocation2 + $0xf]]  ;;  %v325_v21 = vmul.f32 %v1695_v19, %v321_v17  ;;  %v327_v22 = vmul.f32 %v1345_v18, %v1697_v20  ;;  %v1705_v23 = vstv %s1326_s21  ;;  %v1707_v24 = vstv %s1327_s23 }
  0x42   : > { %s1709_s11 = sld [smem:[#allocation2 + $0x10]]  ;;  %s1711_s13 = sld [smem:[#allocation2 + $0x11]]  ;;  %v333_v25 = vmul.f32 %v1705_v23, %v321_v17  ;;  %v335_v26 = vmul.f32 %v1345_v18, %v1707_v24  ;;  %v1715_v27 = vstv %s1328_s25  ;;  %v1717_v28 = vstv %s1329_s26 }
  0x43   : > { %s1342_s17 = sld [smem:[#allocation2 + $0x15]]  ;;  %s1343_s20 = sld [smem:[#allocation2 + $0x16]]  ;;  %v328_v30 = vadd.f32 %v327_v22, %v325_v21  ;;  %v1720_v31 = vstv %s1330_s27  ;;  %v1722_v32 = vstv %s1331_s28  ;;  %v341_v33 = vmul.f32 %v1715_v27, %v321_v17 }
  0x44   : > { %s1725_s21 = sld [smem:[#allocation2 + $0x17]]  ;;  %v336_v34 = vadd.f32 %v335_v26, %v333_v25  ;;  %v343_v35 = vmul.f32 %v1345_v18, %v1717_v28  ;;  %v1729_v36 = vstv %s1681_s29  ;;  %v1732_v37 = vstv %s1683_s30  ;;  %s1933_s23 = sld [smem:[#allocation2 + $0x19]] }
  0x45   : > { %v330_v39 = vadd.f32 %v1720_v31, %v328_v30  ;;  %v1737_v40 = vstv %s1687_s5  ;;  %v1740_v41 = vstv %s1689_s6  ;;  %v385_v42 = vmul.f32 %v1346_v29, %v1695_v19  ;;  %s1960_s25 = sld [smem:[#allocation2 + $0x1b]]  ;;  %s1969_s26 = sld [smem:[#allocation2 + $0x1c]] }
  0x46   : > { %v338_v43 = vadd.f32 %v1722_v32, %v336_v34  ;;  %v344_v44 = vadd.f32 %v343_v35, %v341_v33  ;;  %v1745_v45 = vstv %s1691_s7  ;;  %v1748_v46 = vstv %s1693_s8  ;;  %s1974_s27 = sld [smem:[#allocation2 + $0x1d]]  ;;  %s1980_s28 = sld [smem:[#allocation2 + $0x1e]] }
  0x47   : > { %v331_v47 = vmax.f32 %v330_v39, 0.0  ;;  %v1751_v48 = vstv %s1699_s9  ;;  %v1754_v49 = vstv %s1701_s10  ;;  %v386_v50 = vmul.f32 %v1347_v38, %v1697_v20  ;;  %s1995_s29 = sld [smem:[#allocation2 + $0x1f]]  ;;  %s1999_s30 = sld [smem:[#allocation2 + $0x20]] }
  0x48   : > { %v339_v51 = vmax.f32 %v338_v43, 0.0  ;;  %v346_v52 = vadd.f32 %v1729_v36, %v344_v44  ;;  %v1759_v53 = vstv %s1709_s11  ;;  %v1762_v54 = vstv %s1711_s13  ;;  %s2001_s5 = sld [smem:[#allocation2 + $0x21]]  ;;  %s2007_s6 = sld [smem:[#allocation2 + $0x22]] }
  0x49   : > { %v349_v55 = vmul.f32 %v1732_v37, %v331_v47  ;;  %v1765_v56 = vstv %s1342_s17  ;;  %v360_v57 = vmul.f32 %v1745_v45, %v331_v47  ;;  %v1768_v58 = vstv %s1343_s20  ;;  %s2012_s7 = sld [smem:[#allocation2 + $0x23]]  ;;  %s2018_s8 = sld [smem:[#allocation2 + $0x24]] }
  0x4a   : > { %v347_v59 = vmax.f32 %v346_v52, 0.0  ;;  %v351_v60 = vmul.f32 %v1737_v40, %v339_v51  ;;  %v362_v61 = vmul.f32 %v1748_v46, %v339_v51  ;;  %v371_v62 = vmul.f32 %v1754_v49, %v331_v47  ;;  %s2020_s9 = sld [smem:[#allocation2 + $0x25]]  ;;  %s2032_s10 = sld [smem:[#allocation2 + $0x26]] }
  0x4b   : > { %v373_v63 = vmul.f32 %v1759_v53, %v339_v51  ;;  %v1775_v0 = vstv %s1725_s21  ;;  %v387_v1 = vadd.f32 %v386_v50, %v385_v42  ;;  %v390_v2 = vmul.f32 %v1346_v29, %v1705_v23  ;;  %s2037_s11 = sld [smem:[#allocation2 + $0x27]]  ;;  %s2042_s13 = sld [smem:[#allocation2 + $0x28]] }
  0x4c   : > { %v352_v3 = vadd.f32 %v351_v60, %v349_v55  ;;  %v354_v4 = vmul.f32 %v1740_v41, %v347_v59  ;;  %v363_v5 = vadd.f32 %v362_v61, %v360_v57  ;;  %v365_v6 = vmul.f32 %v1751_v48, %v347_v59  ;;  %s2044_s17 = sld [smem:[#allocation2 + $0x59]]  ;;  %s2057_s21 = sld [smem:[#allocation2 + $0x2a]] }
  0x4d   : > { %v374_v8 = vadd.f32 %v373_v63, %v371_v62  ;;  %v376_v9 = vmul.f32 %v1762_v54, %v347_v59  ;;  %v388_v10 = vadd.f32 %v387_v1, %v1720_v31  ;;  %v391_v11 = vmul.f32 %v1347_v38, %v1707_v24  ;;  %s2052_s20 = sld [smem:[#allocation2 + $0x29]]  ;;  %p2372_p4 = scmp.ne.s32.totalorder %s2370_s24, 0 }
  0x4e   : > { %v355_v13 = vadd.f32 %v354_v4, %v352_v3  ;;  %v366_v14 = vadd.f32 %v365_v6, %v363_v5  ;;  %v395_v15 = vmul.f32 %v1346_v29, %v1715_v27  ;;  %v396_v17 = vmul.f32 %v1347_v38, %v1717_v28  ;;  %v1350_v3 = vld [vmem:[%s1677_s14 + $0x30] sm:$0xff]  ;;  %v1351_v4 = vld [vmem:[%s1677_s14 + $0x38] sm:$0xff] }
  0x4f   : > { %v377_v18 = vadd.f32 %v376_v9, %v374_v8  ;;  %v389_v21 = vmax.f32 %v388_v10, 0.0  ;;  %v392_v22 = vadd.f32 %v391_v11, %v390_v2  ;;  %v425_v25 = vmul.f32 %v1348_v7, %v1695_v19 }
  0x50   : > { %v357_v26 = vadd.f32 %v1765_v56, %v355_v13  ;;  %v368_v30 = vadd.f32 %v1768_v58, %v366_v14  ;;  %v397_v33 = vadd.f32 %v396_v17, %v395_v15  ;;  %v426_v34 = vmul.f32 %v1349_v12, %v1697_v20 }
  0x51   : > { %v379_v35 = vadd.f32 %v1775_v0, %v377_v18  ;;  %v393_v39 = vadd.f32 %v392_v22, %v1722_v32  ;;  %v400_v29 = vmul.f32 %v389_v21, %v1732_v37  ;;  %v407_v38 = vmul.f32 %v389_v21, %v1745_v45 }
  0x52   : > { %v1795_v42 = vmax.f32 %v357_v26, 0.0  ;;  %v1797_v43 = vmax.f32 %v368_v30, 0.0  ;;  %v398_v44 = vadd.f32 %v397_v33, %v1729_v36  ;;  %v414_v47 = vmul.f32 %v389_v21, %v1754_v49 }
  0x53   : > { %v1801_v50 = vmax.f32 %v379_v35, 0.0  ;;  %v394_v51 = vmax.f32 %v393_v39, 0.0  ;;  %v427_v52 = vadd.f32 %v426_v34, %v425_v25  ;;  %v430_v55 = vmul.f32 %v1348_v7, %v1705_v23 }
  0x54   : > { %v399_v57 = vmax.f32 %v398_v44, 0.0  ;;  %v431_v59 = vmul.f32 %v1349_v12, %v1707_v24  ;;  %v435_v60 = vmul.f32 %v1348_v7, %v1715_v27  ;;  %v436_v61 = vmul.f32 %v1349_v12, %v1717_v28 }
  0x55   : > { %v401_v62 = vmul.f32 %v394_v51, %v1737_v40  ;;  %v408_v63 = vmul.f32 %v394_v51, %v1748_v46  ;;  %v415_v1 = vmul.f32 %v394_v51, %v1759_v53  ;;  %v428_v2 = vadd.f32 %v427_v52, %v1720_v31 }
  0x56   : > { %v403_v5 = vmul.f32 %v399_v57, %v1740_v41  ;;  %v410_v6 = vmul.f32 %v399_v57, %v1751_v48  ;;  %v417_v8 = vmul.f32 %v399_v57, %v1762_v54  ;;  %v432_v9 = vadd.f32 %v431_v59, %v430_v55 }
  0x57   : > { %v402_v7 = vadd.f32 %v401_v62, %v400_v29  ;;  %v409_v10 = vadd.f32 %v408_v63, %v407_v38  ;;  %v416_v11 = vadd.f32 %v415_v1, %v414_v47  ;;  %v429_v12 = vmax.f32 %v428_v2, 0.0 }
  0x58   : > { %v433_v13 = vadd.f32 %v432_v9, %v1722_v32  ;;  %v437_v14 = vadd.f32 %v436_v61, %v435_v60  ;;  %v465_v15 = vmul.f32 %v1350_v3, %v1695_v19  ;;  %v466_v17 = vmul.f32 %v1351_v4, %v1697_v20 }
  0x59   : > { %v404_v18 = vadd.f32 %v403_v5, %v402_v7  ;;  %v411_v21 = vadd.f32 %v410_v6, %v409_v10  ;;  %v418_v22 = vadd.f32 %v417_v8, %v416_v11  ;;  %v440_v25 = vmul.f32 %v429_v12, %v1732_v37 }
  0x5a   : > { %v434_v26 = vmax.f32 %v433_v13, 0.0  ;;  %v438_v30 = vadd.f32 %v437_v14, %v1729_v36  ;;  %v447_v33 = vmul.f32 %v429_v12, %v1745_v45  ;;  %v454_v34 = vmul.f32 %v429_v12, %v1754_v49  ;;  %v1352_v12 = vld [vmem:[%s1677_s14 + $0x40] sm:$0xff]  ;;  %v1353_v13 = vld [vmem:[%s1677_s14 + $0x48] sm:$0xff] }
  0x5b   : > { %v405_v35 = vadd.f32 %v404_v18, %v1765_v56  ;;  %v412_v39 = vadd.f32 %v411_v21, %v1768_v58  ;;  %v419_v29 = vadd.f32 %v418_v22, %v1775_v0  ;;  %v467_v38 = vadd.f32 %v466_v17, %v465_v15 }
  0x5c   : > { %v439_v44 = vmax.f32 %v438_v30, 0.0  ;;  %v441_v47 = vmul.f32 %v434_v26, %v1737_v40  ;;  %v448_v51 = vmul.f32 %v434_v26, %v1748_v46  ;;  %v455_v52 = vmul.f32 %v434_v26, %v1759_v53 }
  0x5d   : > { %v1829_v55 = vmax.f32 %v405_v35, 0.0  ;;  %v1831_v57 = vmax.f32 %v412_v39, 0.0  ;;  %v1833_v59 = vmax.f32 %v419_v29, 0.0  ;;  %v468_v60 = vadd.f32 %v467_v38, %v1720_v31 }
  0x5e   : > { %v442_v61 = vadd.f32 %v441_v47, %v440_v25  ;;  %v443_v62 = vmul.f32 %v439_v44, %v1740_v41  ;;  %v449_v63 = vadd.f32 %v448_v51, %v447_v33  ;;  %v450_v1 = vmul.f32 %v439_v44, %v1751_v48 }
  0x5f   : > { %v456_v2 = vadd.f32 %v455_v52, %v454_v34  ;;  %v457_v5 = vmul.f32 %v439_v44, %v1762_v54  ;;  %v469_v6 = vmax.f32 %v468_v60, 0.0  ;;  %v470_v8 = vmul.f32 %v1350_v3, %v1705_v23  ;;  %v1355_v44 = vld [vmem:[%s1677_s14 + $0x58] sm:$0xff] }
  0x60   : > { %v444_v9 = vadd.f32 %v443_v62, %v442_v61  ;;  %v451_v7 = vadd.f32 %v450_v1, %v449_v63  ;;  %v471_v10 = vmul.f32 %v1351_v4, %v1707_v24  ;;  %v475_v11 = vmul.f32 %v1350_v3, %v1715_v27 }
  0x61   : > { %v458_v14 = vadd.f32 %v457_v5, %v456_v2  ;;  %v476_v15 = vmul.f32 %v1351_v4, %v1717_v28  ;;  %v480_v17 = vmul.f32 %v469_v6, %v1732_v37  ;;  %v487_v18 = vmul.f32 %v469_v6, %v1745_v45  ;;  %v1354_v4 = vld [vmem:[%s1677_s14 + $0x50] sm:$0xff] }
  0x62   : > { %v445_v21 = vadd.f32 %v444_v9, %v1765_v56  ;;  %v452_v22 = vadd.f32 %v451_v7, %v1768_v58  ;;  %v472_v25 = vadd.f32 %v471_v10, %v470_v8  ;;  %v494_v26 = vmul.f32 %v469_v6, %v1754_v49 }
  0x63   : > { %v459_v30 = vadd.f32 %v458_v14, %v1775_v0  ;;  %v477_v3 = vadd.f32 %v476_v15, %v475_v11  ;;  %v505_v33 = vmul.f32 %v1352_v12, %v1695_v19  ;;  %v506_v34 = vmul.f32 %v1353_v13, %v1697_v20 }
  0x64   : > { %v1854_v35 = vmax.f32 %v445_v21, 0.0  ;;  %v1856_v39 = vmax.f32 %v452_v22, 0.0  ;;  %v473_v29 = vadd.f32 %v472_v25, %v1722_v32  ;;  %v510_v38 = vmul.f32 %v1352_v12, %v1705_v23 }
  0x65   : > { %v1861_v47 = vmax.f32 %v459_v30, 0.0  ;;  %v478_v51 = vadd.f32 %v477_v3, %v1729_v36  ;;  %v507_v52 = vadd.f32 %v506_v34, %v505_v33  ;;  %v511_v60 = vmul.f32 %v1353_v13, %v1707_v24 }
  0x66   : > { %v474_v61 = vmax.f32 %v473_v29, 0.0  ;;  %v515_v62 = vmul.f32 %v1352_v12, %v1715_v27  ;;  %v516_v63 = vmul.f32 %v1353_v13, %v1717_v28  ;;  %v545_v1 = vmul.f32 %v1354_v4, %v1695_v19 }
  0x67   : > { %v479_v2 = vmax.f32 %v478_v51, 0.0  ;;  %v508_v5 = vadd.f32 %v507_v52, %v1720_v31  ;;  %v512_v6 = vadd.f32 %v511_v60, %v510_v38  ;;  %v546_v8 = vmul.f32 %v1355_v44, %v1697_v20 }
  0x68   : > { %v481_v9 = vmul.f32 %v474_v61, %v1737_v40  ;;  %v488_v7 = vmul.f32 %v474_v61, %v1748_v46  ;;  %v495_v10 = vmul.f32 %v474_v61, %v1759_v53  ;;  %v517_v11 = vadd.f32 %v516_v63, %v515_v62 }
  0x69   : > { %v483_v14 = vmul.f32 %v479_v2, %v1740_v41  ;;  %v490_v12 = vmul.f32 %v479_v2, %v1751_v48  ;;  %v497_v13 = vmul.f32 %v479_v2, %v1762_v54  ;;  %v509_v15 = vmax.f32 %v508_v5, 0.0 }
  0x6a   : > { %v482_v21 = vadd.f32 %v481_v9, %v480_v17  ;;  %v489_v22 = vadd.f32 %v488_v7, %v487_v18  ;;  %v496_v25 = vadd.f32 %v495_v10, %v494_v26  ;;  %v513_v30 = vadd.f32 %v512_v6, %v1722_v32 }
  0x6b   : > { %v518_v3 = vadd.f32 %v517_v11, %v1729_v36  ;;  %v520_v33 = vmul.f32 %v509_v15, %v1732_v37  ;;  %v527_v34 = vmul.f32 %v509_v15, %v1745_v45  ;;  %v534_v29 = vmul.f32 %v509_v15, %v1754_v49 }
  0x6c   : > { %v484_v38 = vadd.f32 %v483_v14, %v482_v21  ;;  %v491_v51 = vadd.f32 %v490_v12, %v489_v22  ;;  %v498_v52 = vadd.f32 %v497_v13, %v496_v25  ;;  %v514_v60 = vmax.f32 %v513_v30, 0.0  ;;  %v1356_v12 = vld [vmem:[%s1677_s14 + $0x60] sm:$0xff]  ;;  %v1357_v25 = vld [vmem:[%s1677_s14 + $0x68] sm:$0xff] }
  0x6d   : > { %v519_v61 = vmax.f32 %v518_v3, 0.0  ;;  %v547_v62 = vadd.f32 %v546_v8, %v545_v1  ;;  %v550_v17 = vmul.f32 %v1354_v4, %v1705_v23  ;;  %v551_v18 = vmul.f32 %v1355_v44, %v1707_v24 }
  0x6e   : > { %v485_v26 = vadd.f32 %v484_v38, %v1765_v56  ;;  %v492_v63 = vadd.f32 %v491_v51, %v1768_v58  ;;  %v499_v2 = vadd.f32 %v498_v52, %v1775_v0  ;;  %v521_v5 = vmul.f32 %v514_v60, %v1737_v40 }
  0x6f   : > { %v523_v6 = vmul.f32 %v519_v61, %v1740_v41  ;;  %v528_v9 = vmul.f32 %v514_v60, %v1748_v46  ;;  %v530_v7 = vmul.f32 %v519_v61, %v1751_v48  ;;  %v535_v1 = vmul.f32 %v514_v60, %v1759_v53 }
  0x70   : > { %v1891_v8 = vmax.f32 %v485_v26, 0.0  ;;  %v1893_v10 = vmax.f32 %v492_v63, 0.0  ;;  %v1895_v11 = vmax.f32 %v499_v2, 0.0  ;;  %v522_v14 = vadd.f32 %v521_v5, %v520_v33 }
  0x71   : > { %v529_v13 = vadd.f32 %v528_v9, %v527_v34  ;;  %v536_v15 = vadd.f32 %v535_v1, %v534_v29  ;;  %v537_v21 = vmul.f32 %v519_v61, %v1762_v54  ;;  %v548_v22 = vadd.f32 %v547_v62, %v1720_v31 }
  0x72   : > { %v524_v30 = vadd.f32 %v523_v6, %v522_v14  ;;  %v552_v3 = vadd.f32 %v551_v18, %v550_v17  ;;  %v555_v38 = vmul.f32 %v1354_v4, %v1715_v27  ;;  %v556_v51 = vmul.f32 %v1355_v44, %v1717_v28 }
  0x73   : > { %v531_v52 = vadd.f32 %v530_v7, %v529_v13  ;;  %v538_v60 = vadd.f32 %v537_v21, %v536_v15  ;;  %v549_v26 = vmax.f32 %v548_v22, 0.0  ;;  %v585_v63 = vmul.f32 %v1356_v12, %v1695_v19 }
  0x74   : > { %v525_v33 = vadd.f32 %v524_v30, %v1765_v56  ;;  %v553_v34 = vadd.f32 %v552_v3, %v1722_v32  ;;  %v557_v29 = vadd.f32 %v556_v51, %v555_v38  ;;  %v586_v61 = vmul.f32 %v1357_v25, %v1697_v20 }
  0x75   : > { %v532_v62 = vadd.f32 %v531_v52, %v1768_v58  ;;  %v539_v17 = vadd.f32 %v538_v60, %v1775_v0  ;;  %v560_v4 = vmul.f32 %v549_v26, %v1732_v37  ;;  %v567_v44 = vmul.f32 %v549_v26, %v1745_v45  ;;  %v1358_v52 = vld [vmem:[%s1677_s14 + $0x70] sm:$0xff] }
  0x76   : > { %v1911_v18 = vmax.f32 %v525_v33, 0.0  ;;  %v554_v2 = vmax.f32 %v553_v34, 0.0  ;;  %v558_v5 = vadd.f32 %v557_v29, %v1729_v36  ;;  %v574_v6 = vmul.f32 %v549_v26, %v1754_v49 }
  0x77   : > { %v1915_v9 = vmax.f32 %v532_v62, 0.0  ;;  %v1917_v7 = vmax.f32 %v539_v17, 0.0  ;;  %v587_v1 = vadd.f32 %v586_v61, %v585_v63  ;;  %v590_v14 = vmul.f32 %v1356_v12, %v1705_v23 }
  0x78   : > { %v559_v13 = vmax.f32 %v558_v5, 0.0  ;;  %v561_v15 = vmul.f32 %v554_v2, %v1737_v40  ;;  %v568_v21 = vmul.f32 %v554_v2, %v1748_v46  ;;  %v575_v22 = vmul.f32 %v554_v2, %v1759_v53 }
  0x79   : > { %v588_v30 = vadd.f32 %v587_v1, %v1720_v31  ;;  %v591_v3 = vmul.f32 %v1357_v25, %v1707_v24  ;;  %v595_v38 = vmul.f32 %v1356_v12, %v1715_v27  ;;  %v596_v51 = vmul.f32 %v1357_v25, %v1717_v28  ;;  %v1359_v1 = vld [vmem:[%s1677_s14 + $0x78] sm:$0xff]  ;;  %s1942_s14 = sld [smem:[#allocation2 + $0x1a]] }
  0x7a   : > { %v562_v60 = vadd.f32 %v561_v15, %v560_v4  ;;  %v563_v26 = vmul.f32 %v559_v13, %v1740_v41  ;;  %v569_v63 = vadd.f32 %v568_v21, %v567_v44  ;;  %v570_v33 = vmul.f32 %v559_v13, %v1751_v48 }
  0x7b   : > { %v576_v34 = vadd.f32 %v575_v22, %v574_v6  ;;  %v577_v29 = vmul.f32 %v559_v13, %v1762_v54  ;;  %v589_v61 = vmax.f32 %v588_v30, 0.0  ;;  %v592_v62 = vadd.f32 %v591_v3, %v590_v14 }
  0x7c   : > { %v564_v17 = vadd.f32 %v563_v26, %v562_v60  ;;  %v571_v2 = vadd.f32 %v570_v33, %v569_v63  ;;  %v597_v5 = vadd.f32 %v596_v51, %v595_v38  ;;  %v625_v12 = vmul.f32 %v1358_v52, %v1695_v19 }
  0x7d   : > { %v578_v25 = vadd.f32 %v577_v29, %v576_v34  ;;  %v593_v4 = vadd.f32 %v592_v62, %v1722_v32  ;;  %v600_v44 = vmul.f32 %v589_v61, %v1732_v37  ;;  %v607_v15 = vmul.f32 %v589_v61, %v1745_v45 }
  0x7e   : > { %v565_v6 = vadd.f32 %v564_v17, %v1765_v56  ;;  %v572_v13 = vadd.f32 %v571_v2, %v1768_v58  ;;  %v598_v14 = vadd.f32 %v597_v5, %v1729_v36  ;;  %v614_v21 = vmul.f32 %v589_v61, %v1754_v49 }
  0x7f   : > { %v579_v19 = vadd.f32 %v578_v25, %v1775_v0  ;;  %v594_v22 = vmax.f32 %v593_v4, 0.0  ;;  %v626_v30 = vmul.f32 %v1359_v1, %v1697_v20  ;;  %v630_v3 = vmul.f32 %v1358_v52, %v1705_v23 }
  0x80   : > { %v1947_v38 = vmax.f32 %v565_v6, 0.0  ;;  %v1949_v51 = vmax.f32 %v572_v13, 0.0  ;;  %v599_v60 = vmax.f32 %v598_v14, 0.0  ;;  %v631_v26 = vmul.f32 %v1359_v1, %v1707_v24 }
  0x81   : > { %v1952_v63 = vmax.f32 %v579_v19, 0.0  ;;  %v601_v33 = vmul.f32 %v594_v22, %v1737_v40  ;;  %v608_v34 = vmul.f32 %v594_v22, %v1748_v46  ;;  %v615_v29 = vmul.f32 %v594_v22, %v1759_v53 }
  0x82   : > { %v603_v20 = vmul.f32 %v599_v60, %v1740_v41  ;;  %v610_v23 = vmul.f32 %v599_v60, %v1751_v48  ;;  %v617_v61 = vmul.f32 %v599_v60, %v1762_v54  ;;  %v627_v62 = vadd.f32 %v626_v30, %v625_v12 }
  0x83   : > { %v602_v17 = vadd.f32 %v601_v33, %v600_v44  ;;  %v609_v2 = vadd.f32 %v608_v34, %v607_v15  ;;  %v616_v24 = vadd.f32 %v615_v29, %v614_v21  ;;  %v632_v5 = vadd.f32 %v631_v26, %v630_v3 }
  0x84   : > { %v628_v25 = vadd.f32 %v627_v62, %v1720_v31  ;;  %v635_v4 = vmul.f32 %v1358_v52, %v1715_v27  ;;  %v636_v6 = vmul.f32 %v1359_v1, %v1717_v28  ;;  %v663_v13 = vstv %s1933_s23  ;;  %s2059_s23 = sld [smem:[#allocation2 + $0x2b]] }
  0x85   : > { %v604_v14 = vadd.f32 %v603_v20, %v602_v17  ;;  %v611_v19 = vadd.f32 %v610_v23, %v609_v2  ;;  %v618_v22 = vadd.f32 %v617_v61, %v616_v24  ;;  %v633_v60 = vadd.f32 %v632_v5, %v1722_v32 }
  0x86   : > { %v629_v12 = vmax.f32 %v628_v25, 0.0  ;;  %v637_v44 = vadd.f32 %v636_v6, %v635_v4  ;;  %v664_v15 = vmul.f32 %v663_v13, %v1795_v42  ;;  %v665_v21 = vstv %s1942_s14  ;;  %s2068_s14 = sld [smem:[#allocation2 + $0x2c]] }
  0x87   : > { %v605_v30 = vadd.f32 %v604_v14, %v1765_v56  ;;  %v612_v31 = vadd.f32 %v611_v19, %v1768_v58  ;;  %v619_v27 = vadd.f32 %v618_v22, %v1775_v0  ;;  %v634_v28 = vmax.f32 %v633_v60, 0.0 }
  0x88   : > { %v638_v52 = vadd.f32 %v637_v44, %v1729_v36  ;;  %v640_v32 = vmul.f32 %v629_v12, %v1732_v37  ;;  %v647_v1 = vmul.f32 %v629_v12, %v1745_v45  ;;  %v654_v3 = vmul.f32 %v629_v12, %v1754_v49 }
  0x89   : > { %v1982_v26 = vmax.f32 %v605_v30, 0.0  ;;  %v1984_v33 = vmax.f32 %v612_v31, 0.0  ;;  %v1986_v34 = vmax.f32 %v619_v27, 0.0  ;;  %v641_v29 = vmul.f32 %v634_v28, %v1737_v40 }
  0x8a   : > { %v639_v20 = vmax.f32 %v638_v52, 0.0  ;;  %v648_v36 = vmul.f32 %v634_v28, %v1748_v46  ;;  %v655_v23 = vmul.f32 %v634_v28, %v1759_v53  ;;  %v666_v37 = vmul.f32 %v665_v21, %v1797_v43 }
  0x8b   : > { %v642_v45 = vadd.f32 %v641_v29, %v640_v32  ;;  %v668_v49 = vmul.f32 %v663_v13, %v1797_v43  ;;  %v669_v61 = vmul.f32 %v665_v21, %v1801_v50  ;;  %v673_v62 = vstv %s1960_s25  ;;  %s2071_s25 = sld [smem:[#allocation2 + $0x2d]] }
  0x8c   : > { %v643_v17 = vmul.f32 %v639_v20, %v1740_v41  ;;  %v649_v2 = vadd.f32 %v648_v36, %v647_v1  ;;  %v650_v40 = vmul.f32 %v639_v20, %v1751_v48  ;;  %v656_v46 = vadd.f32 %v655_v23, %v654_v3 }
  0x8d   : > { %v657_v53 = vmul.f32 %v639_v20, %v1762_v54  ;;  %v667_v24 = vadd.f32 %v666_v37, %v664_v15  ;;  %v670_v5 = vadd.f32 %v669_v61, %v668_v49  ;;  %v674_v25 = vmul.f32 %v673_v62, %v1911_v18 }
  0x8e   : > { %v644_v4 = vadd.f32 %v643_v17, %v642_v45  ;;  %v651_v6 = vadd.f32 %v650_v40, %v649_v2  ;;  %v675_v13 = vstv %s1969_s26  ;;  %v678_v41 = vmul.f32 %v673_v62, %v1915_v9  ;;  %s2077_s26 = sld [smem:[#allocation2 + $0x2e]] }
  0x8f   : > { %v658_v48 = vadd.f32 %v657_v53, %v656_v46  ;;  %v676_v14 = vmul.f32 %v675_v13, %v1915_v9  ;;  %v679_v19 = vmul.f32 %v675_v13, %v1917_v7  ;;  %v685_v22 = vstv %s1974_s27  ;;  %s2079_s27 = sld [smem:[#allocation2 + $0x2f]] }
  0x90   : > { %v645_v54 = vadd.f32 %v644_v4, %v1765_v56  ;;  %v652_v60 = vadd.f32 %v651_v6, %v1768_v58  ;;  %v686_v12 = vmul.f32 %v685_v22, %v1829_v55  ;;  %v687_v44 = vstv %s1980_s28  ;;  %s2088_s28 = sld [smem:[#allocation2 + $0x30]] }
  0x91   : > { %v659_v15 = vadd.f32 %v658_v48, %v1775_v0  ;;  %v677_v21 = vadd.f32 %v676_v14, %v674_v25  ;;  %v680_v30 = vadd.f32 %v679_v19, %v678_v41  ;;  %v688_v31 = vmul.f32 %v687_v44, %v1831_v57 }
  0x92   : > { %v2024_v27 = vmax.f32 %v645_v54, 0.0  ;;  %v2026_v56 = vmax.f32 %v652_v60, 0.0  ;;  %v690_v58 = vmul.f32 %v685_v22, %v1831_v57  ;;  %v691_v28 = vmul.f32 %v687_v44, %v1833_v59 }
  0x93   : > { %v2030_v52 = vmax.f32 %v659_v15, 0.0  ;;  %v681_v32 = vadd.f32 %v677_v21, %v667_v24  ;;  %v682_v1 = vadd.f32 %v680_v30, %v670_v5  ;;  %v689_v3 = vadd.f32 %v688_v31, %v686_v12 }
  0x94   : > { %v692_v0 = vadd.f32 %v691_v28, %v690_v58  ;;  %v697_v29 = vstv %s1995_s29  ;;  %v699_v20 = vstv %s1999_s30  ;;  %v709_v36 = vstv %s2001_s5  ;;  %s2095_s29 = sld [smem:[#allocation2 + $0x31]]  ;;  %s2097_s30 = sld [smem:[#allocation2 + $0x32]] }
  0x95   : > { %v693_v23 = vadd.f32 %v689_v3, %v681_v32  ;;  %v698_v37 = vmul.f32 %v697_v29, %v1947_v38  ;;  %v700_v45 = vmul.f32 %v699_v20, %v1949_v51  ;;  %v702_v49 = vmul.f32 %v697_v29, %v1949_v51  ;;  %s2106_s5 = sld [smem:[#allocation2 + $0x33]] }
  0x96   : > { %v694_v61 = vadd.f32 %v692_v0, %v682_v1  ;;  %v703_v62 = vmul.f32 %v699_v20, %v1952_v63  ;;  %v710_v17 = vmul.f32 %v709_v36, %v1854_v35  ;;  %v711_v2 = vstv %s2007_s6  ;;  %s2108_s6 = sld [smem:[#allocation2 + $0x34]] }
  0x97   : > { %v701_v40 = vadd.f32 %v700_v45, %v698_v37  ;;  %v712_v46 = vmul.f32 %v711_v2, %v1856_v39  ;;  %v714_v53 = vmul.f32 %v709_v36, %v1856_v39  ;;  %v715_v24 = vmul.f32 %v711_v2, %v1861_v47 }
  0x98   : > { %v704_v5 = vadd.f32 %v703_v62, %v702_v49  ;;  %v721_v25 = vstv %s2012_s7  ;;  %v723_v4 = vstv %s2018_s8  ;;  %v733_v6 = vstv %s2020_s9  ;;  %s2115_s7 = sld [smem:[#allocation2 + $0x35]]  ;;  %s2118_s8 = sld [smem:[#allocation2 + $0x36]] }
  0x99   : > { %v705_v13 = vadd.f32 %v701_v40, %v693_v23  ;;  %v713_v41 = vadd.f32 %v712_v46, %v710_v17  ;;  %v716_v48 = vadd.f32 %v715_v24, %v714_v53  ;;  %v722_v14 = vmul.f32 %v721_v25, %v1982_v26  ;;  %s2122_s9 = sld [smem:[#allocation2 + $0x37]] }
  0x9a   : > { %v706_v19 = vadd.f32 %v704_v5, %v694_v61  ;;  %v724_v22 = vmul.f32 %v723_v4, %v1984_v33  ;;  %v726_v54 = vmul.f32 %v721_v25, %v1984_v33  ;;  %v727_v60 = vmul.f32 %v723_v4, %v1986_v34 }
  0x9b   : > { %v717_v12 = vadd.f32 %v713_v41, %v705_v13  ;;  %v734_v44 = vmul.f32 %v733_v6, %v1891_v8  ;;  %v735_v15 = vstv %s2032_s10  ;;  %v738_v21 = vmul.f32 %v733_v6, %v1893_v10  ;;  %s2127_s10 = sld [smem:[#allocation2 + $0x38]] }
  0x9c   : > { %v718_v30 = vadd.f32 %v716_v48, %v706_v19  ;;  %v725_v31 = vadd.f32 %v724_v22, %v722_v14  ;;  %v728_v58 = vadd.f32 %v727_v60, %v726_v54  ;;  %v736_v28 = vmul.f32 %v735_v15, %v1893_v10 }
  0x9d   : > { %v739_v32 = vmul.f32 %v735_v15, %v1895_v11  ;;  %v745_v1 = vstv %s2037_s11  ;;  %v747_v3 = vstv %s2042_s13  ;;  %v757_v0 = vstv %s2044_s17  ;;  %s2129_s11 = sld [smem:[#allocation2 + $0x5a]]  ;;  %s2135_s13 = sld [smem:[#allocation2 + $0x39]] }
  0x9e   : > { %v729_v29 = vadd.f32 %v725_v31, %v717_v12  ;;  %v730_v20 = vadd.f32 %v728_v58, %v718_v30  ;;  %v737_v36 = vadd.f32 %v736_v28, %v734_v44  ;;  %v746_v23 = vmul.f32 %v745_v1, %v2024_v27  ;;  %s2141_s17 = sld [smem:[#allocation2 + $0x3a]] }
  0x9f   : > { %v740_v37 = vadd.f32 %v739_v32, %v738_v21  ;;  %v748_v45 = vmul.f32 %v747_v3, %v2026_v56  ;;  %v750_v49 = vmul.f32 %v745_v1, %v2026_v56  ;;  %v751_v61 = vmul.f32 %v747_v3, %v2030_v52 }
  0xa0   : > { %v741_v62 = vadd.f32 %v737_v36, %v729_v29  ;;  %v768_v17 = vstv %s2052_s20  ;;  %v770_v2 = vstv %s2057_s21  ;;  %v778_v40 = vstv %s2059_s23  ;;  %s2143_s20 = sld [smem:[#allocation2 + $0x3b]]  ;;  %s2152_s21 = sld [smem:[#allocation2 + $0x3c]] }
  0xa1   : > { %v742_v46 = vadd.f32 %v740_v37, %v730_v20  ;;  %v749_v53 = vadd.f32 %v748_v45, %v746_v23  ;;  %v752_v24 = vadd.f32 %v751_v61, %v750_v49  ;;  %v769_v5 = vmul.f32 %v768_v17, %v1795_v42  ;;  %s2156_s23 = sld [smem:[#allocation2 + $0x3d]] }
  0xa2   : > { %v771_v25 = vmul.f32 %v770_v2, %v1797_v43  ;;  %v773_v4 = vmul.f32 %v768_v17, %v1797_v43  ;;  %v774_v6 = vmul.f32 %v770_v2, %v1801_v50  ;;  %v779_v13 = vmul.f32 %v778_v40, %v1911_v18 }
  0xa3   : > { %v753_v41 = vadd.f32 %v749_v53, %v741_v62  ;;  %v754_v48 = vadd.f32 %v752_v24, %v742_v46  ;;  %v780_v14 = vstv %s2068_s14  ;;  %v783_v19 = vmul.f32 %v778_v40, %v1915_v9  ;;  %s2162_s14 = sld [smem:[#allocation2 + $0x3e]] }
  0xa4   : > { %v772_v22 = vadd.f32 %v771_v25, %v769_v5  ;;  %v775_v54 = vadd.f32 %v774_v6, %v773_v4  ;;  %v781_v60 = vmul.f32 %v780_v14, %v1915_v9  ;;  %v784_v12 = vmul.f32 %v780_v14, %v1917_v7 }
  0xa5   : > { %v756_v44 = vmax.f32 %v753_v41, %v754_v48  ;;  %v790_v15 = vstv %s2071_s25  ;;  %v792_v21 = vstv %s2077_s26  ;;  %v802_v30 = vstv %s2079_s27  ;;  %s2164_s25 = sld [smem:[#allocation2 + $0x3f]]  ;;  %s2173_s26 = sld [smem:[#allocation2 + $0x40]] }
  0xa6   : > { %v782_v31 = vadd.f32 %v781_v60, %v779_v13  ;;  %v785_v58 = vadd.f32 %v784_v12, %v783_v19  ;;  %v791_v28 = vmul.f32 %v790_v15, %v1829_v55  ;;  %v793_v32 = vmul.f32 %v792_v21, %v1831_v57  ;;  %s2180_s27 = sld [smem:[#allocation2 + $0x41]] }
  0xa7   : > { %v758_v1 = vadd.f32 %v757_v0, %v756_v44  ;;  %v795_v3 = vmul.f32 %v790_v15, %v1831_v57  ;;  %v796_v29 = vmul.f32 %v792_v21, %v1833_v59  ;;  %v803_v20 = vmul.f32 %v802_v30, %v1947_v38 }
  0xa8   : > { %v786_v36 = vadd.f32 %v782_v31, %v772_v22  ;;  %v787_v23 = vadd.f32 %v785_v58, %v775_v54  ;;  %v794_v37 = vadd.f32 %v793_v32, %v791_v28  ;;  %v804_v45 = vstv %s2088_s28  ;;  %s2182_s28 = sld [smem:[#allocation2 + $0x42]] }
  0xa9   : > { %v759_v49 = vmax.f32 %v758_v1, 0.0  ;;  %v797_v61 = vadd.f32 %v796_v29, %v795_v3  ;;  %v805_v0 = vmul.f32 %v804_v45, %v1949_v51  ;;  %v807_v62 = vmul.f32 %v802_v30, %v1949_v51 }
  0xaa   : > { %v798_v17 = vadd.f32 %v794_v37, %v786_v36  ;;  %v808_v2 = vmul.f32 %v804_v45, %v1952_v63  ;;  %v814_v40 = vstv %s2095_s29  ;;  %v816_v46 = vstv %s2097_s30  ;;  %s2191_s29 = sld [smem:[#allocation2 + $0x43]]  ;;  %s2193_s30 = sld [smem:[#allocation2 + $0x44]] }
  0xab   : > { %v761_v53 = vrot.slane %v759_v49, 1  ;;  %v799_v24 = vadd.f32 %v797_v61, %v787_v23  ;;  %v806_v5 = vadd.f32 %v805_v0, %v803_v20  ;;  %v815_v25 = vmul.f32 %v814_v40, %v1854_v35 }
  0xac   : > { %v809_v4 = vadd.f32 %v808_v2, %v807_v62  ;;  %v817_v6 = vmul.f32 %v816_v46, %v1856_v39  ;;  %v819_v13 = vmul.f32 %v814_v40, %v1856_v39  ;;  %v820_v41 = vmul.f32 %v816_v46, %v1861_v47 }
  0xad   : > { %v2137_v48 = vmax.f32 %v759_v49, %v761_v53  ;;  %v810_v14 = vadd.f32 %v806_v5, %v798_v17  ;;  %v826_v19 = vstv %s2106_s5  ;;  %v828_v22 = vstv %s2108_s6  ;;  %s2201_s5 = sld [smem:[#allocation2 + $0x45]]  ;;  %s2203_s6 = sld [smem:[#allocation2 + $0x46]] }
  0xae   : > { %v811_v54 = vadd.f32 %v809_v4, %v799_v24  ;;  %v818_v60 = vadd.f32 %v817_v6, %v815_v25  ;;  %v821_v12 = vadd.f32 %v820_v41, %v819_v13  ;;  %v827_v44 = vmul.f32 %v826_v19, %v1982_v26 }
  0xaf   : > { %v829_v15 = vmul.f32 %v828_v22, %v1984_v33  ;;  %v831_v21 = vmul.f32 %v826_v19, %v1984_v33  ;;  %v832_v30 = vmul.f32 %v828_v22, %v1986_v34  ;;  %v838_v31 = vstv %s2115_s7  ;;  %s2207_s7 = sld [smem:[#allocation2 + $0x47]] }
  0xb0   : > { %v822_v58 = vadd.f32 %v818_v60, %v810_v14  ;;  %v823_v28 = vadd.f32 %v821_v12, %v811_v54  ;;  %v839_v32 = vmul.f32 %v838_v31, %v1891_v8  ;;  %v840_v1 = vstv %s2118_s8  ;;  %s2212_s8 = sld [smem:[#allocation2 + $0x48]] }
  0xb1   : > { %v830_v3 = vadd.f32 %v829_v15, %v827_v44  ;;  %v833_v29 = vadd.f32 %v832_v30, %v831_v21  ;;  %v841_v20 = vmul.f32 %v840_v1, %v1893_v10  ;;  %v843_v36 = vmul.f32 %v838_v31, %v1893_v10 }
  0xb2   : > { %v844_v23 = vmul.f32 %v840_v1, %v1895_v11  ;;  %v850_v37 = vstv %s2122_s9  ;;  %v852_v45 = vstv %s2127_s10  ;;  %v862_v49 = vstv %s2129_s11  ;;  %s2220_s9 = sld [smem:[#allocation2 + $0x49]]  ;;  %s2222_s10 = sld [smem:[#allocation2 + $0x4a]] }
  0xb3   : > { %v834_v61 = vadd.f32 %v830_v3, %v822_v58  ;;  %v835_v0 = vadd.f32 %v833_v29, %v823_v28  ;;  %v842_v62 = vadd.f32 %v841_v20, %v839_v32  ;;  %v851_v17 = vmul.f32 %v850_v37, %v2024_v27  ;;  %s2229_s11 = sld [smem:[#allocation2 + $0x4b]] }
  0xb4   : > { %v845_v2 = vadd.f32 %v844_v23, %v843_v36  ;;  %v853_v40 = vmul.f32 %v852_v45, %v2026_v56  ;;  %v855_v46 = vmul.f32 %v850_v37, %v2026_v56  ;;  %v856_v53 = vmul.f32 %v852_v45, %v2030_v52 }
  0xb5   : > { %v846_v24 = vadd.f32 %v842_v62, %v834_v61  ;;  %v872_v5 = vstv %s2135_s13  ;;  %v874_v25 = vstv %s2141_s17  ;;  %v882_v4 = vstv %s2143_s20  ;;  %s2233_s13 = sld [smem:[#allocation2 + $0x4c]]  ;;  %s2243_s17 = sld [smem:[#allocation2 + $0x4d]] }
  0xb6   : > { %v847_v6 = vadd.f32 %v845_v2, %v835_v0  ;;  %v854_v13 = vadd.f32 %v853_v40, %v851_v17  ;;  %v857_v41 = vadd.f32 %v856_v53, %v855_v46  ;;  %v873_v14 = vmul.f32 %v872_v5, %v1795_v42  ;;  %s2245_s20 = sld [smem:[#allocation2 + $0x4e]] }
  0xb7   : > { %v875_v19 = vmul.f32 %v874_v25, %v1797_v43  ;;  %v877_v22 = vmul.f32 %v872_v5, %v1797_v43  ;;  %v878_v54 = vmul.f32 %v874_v25, %v1801_v50  ;;  %v883_v60 = vmul.f32 %v882_v4, %v1911_v18 }
  0xb8   : > { %v858_v12 = vadd.f32 %v854_v13, %v846_v24  ;;  %v859_v44 = vadd.f32 %v857_v41, %v847_v6  ;;  %v884_v15 = vstv %s2152_s21  ;;  %v887_v21 = vmul.f32 %v882_v4, %v1915_v9  ;;  %s2251_s21 = sld [smem:[#allocation2 + $0x5b]] }
  0xb9   : > { %v876_v30 = vadd.f32 %v875_v19, %v873_v14  ;;  %v879_v31 = vadd.f32 %v878_v54, %v877_v22  ;;  %v885_v58 = vmul.f32 %v884_v15, %v1915_v9  ;;  %v888_v28 = vmul.f32 %v884_v15, %v1917_v7 }
  0xba   : > { %v861_v32 = vmax.f32 %v858_v12, %v859_v44  ;;  %v894_v1 = vstv %s2156_s23  ;;  %v896_v3 = vstv %s2162_s14  ;;  %v906_v29 = vstv %s2164_s25  ;;  %s2253_s23 = sld [smem:[#allocation2 + $0x4f]]  ;;  %s2257_s14 = sld [smem:[#allocation2 + $0x50]] }
  0xbb   : > { %v886_v20 = vadd.f32 %v885_v58, %v883_v60  ;;  %v889_v36 = vadd.f32 %v888_v28, %v887_v21  ;;  %v895_v23 = vmul.f32 %v894_v1, %v1829_v55  ;;  %v897_v37 = vmul.f32 %v896_v3, %v1831_v57  ;;  %s2264_s25 = sld [smem:[#allocation2 + $0x51]] }
  0xbc   : > { %v863_v45 = vadd.f32 %v862_v49, %v861_v32  ;;  %v899_v61 = vmul.f32 %v894_v1, %v1831_v57  ;;  %v900_v0 = vmul.f32 %v896_v3, %v1833_v59  ;;  %v907_v62 = vmul.f32 %v906_v29, %v1947_v38 }
  0xbd   : > { %v890_v17 = vadd.f32 %v886_v20, %v876_v30  ;;  %v891_v2 = vadd.f32 %v889_v36, %v879_v31  ;;  %v898_v40 = vadd.f32 %v897_v37, %v895_v23  ;;  %v908_v46 = vstv %s2173_s26  ;;  %s2270_s26 = sld [smem:[#allocation2 + $0x52]] }
  0xbe   : > { %v864_v53 = vmax.f32 %v863_v45, 0.0  ;;  %v901_v24 = vadd.f32 %v900_v0, %v899_v61  ;;  %v909_v49 = vmul.f32 %v908_v46, %v1949_v51  ;;  %v911_v5 = vmul.f32 %v906_v29, %v1949_v51 }
  0xbf   : > { %v902_v25 = vadd.f32 %v898_v40, %v890_v17  ;;  %v912_v4 = vmul.f32 %v908_v46, %v1952_v63  ;;  %v918_v6 = vstv %s2180_s27  ;;  %v920_v13 = vstv %s2182_s28  ;;  %s2272_s27 = sld [smem:[#allocation2 + $0x53]]  ;;  %s2280_s28 = sld [smem:[#allocation2 + $0x54]] }
  0xc0   : > { %v866_v41 = vrot.slane %v864_v53, 1  ;;  %v903_v14 = vadd.f32 %v901_v24, %v891_v2  ;;  %v910_v19 = vadd.f32 %v909_v49, %v907_v62  ;;  %v919_v22 = vmul.f32 %v918_v6, %v1854_v35 }
  0xc1   : > { %v913_v54 = vadd.f32 %v912_v4, %v911_v5  ;;  %v921_v60 = vmul.f32 %v920_v13, %v1856_v39  ;;  %v923_v12 = vmul.f32 %v918_v6, %v1856_v39  ;;  %v924_v44 = vmul.f32 %v920_v13, %v1861_v47 }
  0xc2   : > { %v869_v15 = vmax.f32 %v864_v53, %v866_v41  ;;  %v914_v21 = vadd.f32 %v910_v19, %v902_v25  ;;  %v930_v30 = vstv %s2191_s29  ;;  %v932_v31 = vstv %s2193_s30  ;;  %s2285_s29 = sld [smem:[#allocation2 + $0x55]]  ;;  %s2287_s30 = sld [smem:[#allocation2 + $0x56]] }
  0xc3   : > { %v915_v58 = vadd.f32 %v913_v54, %v903_v14  ;;  %v922_v28 = vadd.f32 %v921_v60, %v919_v22  ;;  %v925_v32 = vadd.f32 %v924_v44, %v923_v12  ;;  %v931_v1 = vmul.f32 %v930_v30, %v1982_v26 }
  0xc4   : > { %v1459_v3 = vpack.c.bf16 %v869_v15, %v2137_v48  ;;  %v933_v29 = vmul.f32 %v932_v31, %v1984_v33  ;;  %v935_v20 = vmul.f32 %v930_v30, %v1984_v33  ;;  %v936_v36 = vmul.f32 %v932_v31, %v1986_v34 }
  0xc5   : > { %v926_v23 = vadd.f32 %v922_v28, %v914_v21  ;;  %v927_v37 = vadd.f32 %v925_v32, %v915_v58  ;;  %v942_v45 = vstv %s2201_s5  ;;  %v944_v61 = vstv %s2203_s6  ;;  %s2291_s5 = sld [smem:[#allocation2 + $0x57]]  ;;  %s2293_s6 = sld [smem:[#allocation2 + $0x58]] }
  0xc6   : > { %1460 = vmatpush3.bf16.msra.mxu0 %v1459_v3  ;;  %1466 = vmatpush3.bf16.msra.mxu1 %v1459_v3  ;;  %v934_v0 = vadd.f32 %v933_v29, %v931_v1  ;;  %v937_v62 = vadd.f32 %v936_v36, %v935_v20  ;;  %v943_v48 = vmul.f32 %v942_v45, %v1891_v8  ;;  %v954_v17 = vstv %s2207_s7  ;;  %s2314_s7 = sld [smem:[#allocation2 + $0x5c]] }
  0xc7   : > { %1461 = vmatprep.subr.bf16.mxu0 %v1560_v16  ;;  %1465 = vmatprep.subr.bf16.mxu1 %v1560_v16  ;;  %v945_v2 = vmul.f32 %v944_v61, %v1893_v10  ;;  %v947_v40 = vmul.f32 %v942_v45, %v1893_v10  ;;  %v948_v46 = vmul.f32 %v944_v61, %v1895_v11  ;;  %v956_v53 = vstv %s2212_s8 }
  0xc8   : > { %v938_v24 = vadd.f32 %v934_v0, %v926_v23  ;;  %v939_v49 = vadd.f32 %v937_v62, %v927_v37  ;;  %v955_v5 = vmul.f32 %v954_v17, %v2024_v27  ;;  %v957_v25 = vmul.f32 %v956_v53, %v2026_v56 }
  0xc9   : > { %v946_v16 = vadd.f32 %v945_v2, %v943_v48  ;;  %v949_v4 = vadd.f32 %v948_v46, %v947_v40  ;;  %v959_v6 = vmul.f32 %v954_v17, %v2026_v56  ;;  %v960_v13 = vmul.f32 %v956_v53, %v2030_v52 }
  0xca   : > { %v958_v41 = vadd.f32 %v957_v25, %v955_v5  ;;  %v976_v14 = vstv %s2220_s9  ;;  %v978_v19 = vstv %s2222_s10  ;;  %v986_v30 = vstv %s2229_s11 }
  0xcb   : > { %v950_v22 = vadd.f32 %v946_v16, %v938_v24  ;;  %v951_v54 = vadd.f32 %v949_v4, %v939_v49  ;;  %v961_v60 = vadd.f32 %v960_v13, %v959_v6  ;;  %v977_v12 = vmul.f32 %v976_v14, %v1795_v42 }
  0xcc   : > { %v979_v44 = vmul.f32 %v978_v19, %v1797_v43  ;;  %v981_v15 = vmul.f32 %v976_v14, %v1797_v43  ;;  %v982_v21 = vmul.f32 %v978_v19, %v1801_v50  ;;  %v987_v58 = vmul.f32 %v986_v30, %v1911_v18 }
  0xcd   : > { %v962_v31 = vadd.f32 %v958_v41, %v950_v22  ;;  %v988_v28 = vstv %s2233_s13  ;;  %v963_v32 = vadd.f32 %v961_v60, %v951_v54  ;;  %v991_v3 = vmul.f32 %v986_v30, %v1915_v9 }
  0xce   : > { %v980_v1 = vadd.f32 %v979_v44, %v977_v12  ;;  %v989_v42 = vmul.f32 %v988_v28, %v1915_v9  ;;  %v983_v43 = vadd.f32 %v982_v21, %v981_v15  ;;  %v992_v50 = vmul.f32 %v988_v28, %v1917_v7 }
  0xcf   : > { %v998_v29 = vstv %s2243_s17  ;;  %v1000_v20 = vstv %s2245_s20  ;;  %v966_v9 = vstv %s2251_s21  ;;  %v1010_v0 = vstv %s2253_s23 }
  0xd0   : > { %v990_v18 = vadd.f32 %v989_v42, %v987_v58  ;;  %v999_v36 = vmul.f32 %v998_v29, %v1829_v55  ;;  %v1001_v23 = vmul.f32 %v1000_v20, %v1831_v57  ;;  %v1003_v37 = vmul.f32 %v998_v29, %v1831_v57 }
  0xd1   : > { %v993_v45 = vadd.f32 %v992_v50, %v991_v3  ;;  %v1004_v61 = vmul.f32 %v1000_v20, %v1833_v59  ;;  %v1011_v55 = vmul.f32 %v1010_v0, %v1947_v38  ;;  %v1012_v48 = vstv %s2257_s14 }
  0xd2   : > { %v994_v7 = vadd.f32 %v990_v18, %v980_v1  ;;  %v1002_v62 = vadd.f32 %v1001_v23, %v999_v36  ;;  %v965_v57 = vmax.f32 %v962_v31, %v963_v32  ;;  %v1013_v2 = vmul.f32 %v1012_v48, %v1949_v51 }
  0xd3   : > { %v995_v17 = vadd.f32 %v993_v45, %v983_v43  ;;  %v1005_v59 = vadd.f32 %v1004_v61, %v1003_v37  ;;  %v1015_v46 = vmul.f32 %v1010_v0, %v1949_v51  ;;  %v1016_v53 = vmul.f32 %v1012_v48, %v1952_v63 }
  0xd4   : > { %v1006_v40 = vadd.f32 %v1002_v62, %v994_v7  ;;  %v1022_v24 = vstv %s2264_s25  ;;  %v1014_v49 = vadd.f32 %v1013_v2, %v1011_v55  ;;  %v1024_v16 = vstv %s2270_s26  ;;  %v1082_v7 = vld [vmem:[%s2367_s3 + $0x8] sm:$0xff] }
  0xd5   : > { %v1007_v38 = vadd.f32 %v1005_v59, %v995_v17  ;;  %v1023_v5 = vmul.f32 %v1022_v24, %v1854_v35  ;;  %v1017_v25 = vadd.f32 %v1016_v53, %v1015_v46  ;;  %v1027_v4 = vmul.f32 %v1022_v24, %v1856_v39  ;;  %v1079_v46 = vld [vmem:[%s2366_s2 + $0x8] sm:$0xff]  ;;  %v1080_v53 = vld [vmem:[%s2366_s2 + $0x10] sm:$0xff] }
  0xd6   : > { %v1034_v6 = vstv %s2272_s27  ;;  %v967_v13 = vadd.f32 %v966_v9, %v965_v57  ;;  %v1018_v41 = vadd.f32 %v1014_v49, %v1006_v40  ;;  %v1025_v51 = vmul.f32 %v1024_v16, %v1856_v39  ;;  %v1078_v40 = vld [vmem:[%s2366_s2] sm:$0xff]  ;;  %s1468_s27 = smul.u32 24, %s275_s12 }
  0xd7   : > { %v1028_v63 = vmul.f32 %v1024_v16, %v1861_v47  ;;  %v1019_v14 = vadd.f32 %v1017_v25, %v1007_v38  ;;  %v1035_v19 = vmul.f32 %v1034_v6, %v1982_v26  ;;  %v1036_v22 = vstv %s2280_s28 }
  0xd8   : > { %v1039_v35 = vmul.f32 %v1034_v6, %v1984_v33  ;;  %v1026_v54 = vadd.f32 %v1025_v51, %v1023_v5  ;;  %v1037_v12 = vmul.f32 %v1036_v22, %v1984_v33  ;;  %v1040_v44 = vmul.f32 %v1036_v22, %v1986_v34  ;;  %s299_s28 = scalar_lea.vmem [#allocation5], %s1468_s27 }
  0xd9   : > { %v1029_v60 = vadd.f32 %v1028_v63, %v1027_v4  ;;  %v1046_v15 = vstv %s2285_s29  ;;  %v1048_v21 = vstv %s2287_s30  ;;  %v1058_v30 = vstv %s2291_s5  ;;  %s1431_s29 = sshll.u32 (%p2372_p4), %s1605_s18, 3 }
  0xda   : > { %v1060_v31 = vstv %s2293_s6  ;;  %v1030_v58 = vadd.f32 %v1026_v54, %v1018_v41  ;;  %v1038_v28 = vadd.f32 %v1037_v12, %v1035_v19  ;;  %v1041_v47 = vadd.f32 %v1040_v44, %v1039_v35  ;;  %s1206_s15 = scalar_lea.vmem (%p2372_p4), %s2368_s4, %s1431_s29 }
  0xdb   : > { %v1031_v39 = vadd.f32 %v1029_v60, %v1019_v14  ;;  %v1047_v26 = vmul.f32 %v1046_v15, %v1891_v8  ;;  %v1049_v32 = vmul.f32 %v1048_v21, %v1893_v10  ;;  %v1051_v1 = vmul.f32 %v1046_v15, %v1893_v10 }
  0xdc   : > { %v1052_v33 = vmul.f32 %v1048_v21, %v1895_v11  ;;  %v1042_v42 = vadd.f32 %v1038_v28, %v1030_v58  ;;  %v1059_v3 = vmul.f32 %v1058_v30, %v2024_v27  ;;  %v1061_v43 = vmul.f32 %v1060_v31, %v2026_v56  ;;  %v1081_v11 = vld [vmem:[%s2367_s3] sm:$0xff]  ;;  %v1083_v27 = vld [vmem:[%s2367_s3 + $0x10] sm:$0xff] }
  0xdd   : > { %v1043_v34 = vadd.f32 %v1041_v47, %v1031_v39  ;;  %v1050_v50 = vadd.f32 %v1049_v32, %v1047_v26  ;;  %v1063_v20 = vmul.f32 %v1058_v30, %v2026_v56  ;;  %v1064_v18 = vmul.f32 %v1060_v31, %v2030_v52 }
  0xde   : > { %v1053_v29 = vadd.f32 %v1052_v33, %v1051_v1  ;;  %v1062_v36 = vadd.f32 %v1061_v43, %v1059_v3  ;;  %v1562_v10 = vmov 0.0   ;;  %v968_v56 = vmax.f32 %v967_v13, 0.0 }
  0xdf   : > { %v1054_v8 = vadd.f32 %v1050_v50, %v1042_v42  ;;  %v1065_v37 = vadd.f32 %v1064_v18, %v1063_v20  ;;  %1449 = vmatprep.mubr.msk.f32.mxu0 %vm1561_vm0, %v1562_v10  ;;  %1452 = vmatprep.mubr.msk.f32.mxu1 %vm1561_vm0, %v1562_v10  ;;  %v1563_v45 = vmov 0   ;;  %v1070_v61 = vstv %s2314_s7 }
  0xe0   : > { %v1055_v23 = vadd.f32 %v1053_v29, %v1043_v34  ;;  %1508 = vset.pattern.permute.xlu0 %v1563_v45  ;;  %1509 = vset.pattern.permute.xlu1 %v1563_v45  ;;  %v970_v62 = vrot.slane %v968_v56, 1 }
  0xe1   : > { %v1066_v52 = vadd.f32 %v1062_v36, %v1054_v8  ;;  %1086 = vperm.xlu0 %1508, %v1081_v11   ;;  %1096 = vperm.xlu1 %1509, %v1083_v27  }
  0xe2   : > { %v1067_v9 = vadd.f32 %v1065_v37, %v1055_v23  ;;  %v973_v57 = vmax.f32 %v968_v56, %v970_v62 }
  0xe4   : > { %v1069_v0 = vmax.f32 %v1066_v52, %v1067_v9 }
  0xe5   : > { %1091 = vperm.xlu0 %1508, %v1082_v7  }
  0xe6   : > { %v1071_v55 = vadd.f32 %v1070_v61, %v1069_v0 }
  0xe8   : > { %v1072_v48 = vmax.f32 %v1071_v55, 0.0 }
  0xea   : > { %v1074_v17 = vrot.slane %v1072_v48, 1 }
  0xec   : > { %v1077_v59 = vmax.f32 %v1072_v48, %v1074_v17 }
  0xee   : > { %v1462_v2 = vpack.c.bf16 %v1077_v59, %v973_v57 }
  0xf0   : > { %1463 = vmatpush3.bf16.msra.mxu0 %v1462_v2  ;;  %1467 = vmatpush3.bf16.msra.mxu1 %v1462_v2 }
  0xf3   : > { %1450 = vmatmul.mubr.msk.f32.vlgmr.msra.gmra.mrb[0].mxu0 %vm1099_vm1, %v1078_v40  ;;  %1453 = vmatmul.mubr.msk.f32.vlgmr.msra.gmra.mrb[0].mxu1 %vm1099_vm1, %v1079_v46 }
  0xf4   : > { %1455 = vmatprep.mubr.msk.f32.mxu1 %vm1561_vm0, %v1562_v10 }
  0xf7   : > { %1456 = vmatmul.mubr.msk.f32.gmra.mrb[2].mxu1 %vm1099_vm1, %v1080_v53 }
 0x160   : > { %v1087_v24 = vpop.permute.xlu0 %1086  ;;  %v1097_v13 = vpop.permute.xlu1 %1096 }
 0x164   : > { %v1092_v38 = vpop.permute.xlu0 %1091 }
 0x1c6   : > { %v1175_v49 = vpop.f32.mrb[0].mxu0  ;;  %v1180_v5 = vpop.f32.mrb[0].mxu1 }
 0x1c7   : > { %v1176_v25 = vadd.f32 %v1175_v49, %v1087_v24  ;;  %v1181_v16 = vadd.f32 %v1180_v5, %v1092_v38  ;;  %v1454_v4 = vpop.f32.mrb[1].mxu1  ;;  %v1451_v6 = vpop.f32.mrb[1].mxu0 }
 0x1c9   : > { %v1189_v41 = vmax.f32 %v1176_v25, 0.0  ;;  %v1190_v51 = vmax.f32 %v1181_v16, 0.0 }
 0x1ca   : > { %v1185_v63 = vpop.f32.mrb[2].mxu1 }
 0x1cb   : > { %1510 = vtanh.f32 %v1189_v41  ;;  %v1186_v14 = vadd.f32 %v1185_v63, %v1097_v13  ;;  %v1457_v19 = vpop.f32.mrb[3].mxu1 }
 0x1cc   : > { %1512 = vtanh.f32 %v1190_v51 }
 0x1cd   : > { %v1191_v22 = vmax.f32 %v1186_v14, 0.0 }
 0x1cf   : > { %1514 = vtanh.f32 %v1191_v22 }
 0x1d4   : > { %1204 = sbr.rel (!%p2372_p4) target bundleno = 483 (0x1e3), region = 82 }
 0x1d5   : > { %v1511_v35 = vpop.eup %1510 }
 0x1d6   : > { %v1513_v54 = vpop.eup %1512  ;;  %1195 = vst [vmem:[%s299_s28] sm:$0xff] %v1511_v35 }
 0x1d7   : > { %1196 = vst [vmem:[%s299_s28 + $0x8] sm:$0xff] %v1513_v54 }
 0x1d9   : > { %v1515_v60 = vpop.eup %1514 }
 0x1da   : > { %1197 = vst [vmem:[%s299_s28 + $0x10] sm:$0xff] %v1515_v60 }
 0x1dd   : > { %v1238_v12 = vld [vmem:[%s299_s28] sm:$0xff] }
 0x1de   : > { %v1240_v44 = vld [vmem:[%s299_s28 + $0x8] sm:$0xff]  ;;  %1239 = vst [vmem:[%s1206_s15] sm:$0xff] %v1238_v12 }
 0x1df   : > { %1241 = vst [vmem:[%s1206_s15 + $0x10] sm:$0xff] %v1240_v44 }
 0x1e1   : > { %v1242_v15 = vld [vmem:[%s299_s28 + $0x10] sm:$0xff] }
 0x1e2   : > { %1243 = vst [vmem:[%s1206_s15 + $0x20] sm:$0xff] %v1242_v15 }
 0x1e3 PF: > { %p12_p5 = scmp.ge.s32.totalorder %s1608_s19, 4   ;;  %s2373_s15 = smov %s1553_s16 }
 0x1e4   : > { %s2374_s16 = smov %s1618_s22  ;;  %s2375_s17 = smov %s1608_s19 }
 0x1e5   :  { %14 = sbr.rel (!%p12_p5) target bundleno = 2 (0x2), region = 167 }
 0x1ec   :  { %1259 = vsyncpa [#allocation3], 1 }
 0x1ed   :  { %1261 = vsyncpa [#allocation3 + $0x1], 1 }

</bundles_post_ra>
